<compile_context>
chip_gen: v6e
topology: v6e:2x2x1
jax: 0.10.0
libtpu: 0.0.40
codegen_flags: <defaults>
</compile_context>

<pallas_src>
import jax
import jax.numpy as jnp
from jax import lax
from jax.experimental import pallas as pl
from jax.experimental.pallas import tpu as pltpu


def _round_up(n, m):
    return ((n + m - 1) // m) * m


# ----------------------------------------------------------------------------
# Parameter / graph packing: one lane-dense f32 slab with static row offsets.
# ----------------------------------------------------------------------------
def _slab_layout(num_nodes, input_dims, seq_emb, gcn_hidden, node_emb,
                 event_emb, num_classes, batch):
    N, T, H = num_nodes, input_dims, seq_emb
    Gh, Ne, Ee, C, B = gcn_hidden, node_emb, event_emb, num_classes, batch
    Np = _round_up(N, 8)                               # padded LSTM feature dim
    width = _round_up(max(4 * H, Gh, Ne, Ee, C, B * N), 128)
    offs, row = {}, 0

    def add(name, nrows):
        nonlocal row
        offs[name] = row
        row += _round_up(nrows, 8)                     # keep every section 8-aligned

    add("wih", Np)
    add("whh", H)
    add("w1", T)
    add("w2", Gh)
    add("w3a", H)
    add("w3b", Ne)
    add("w4", Ee)
    add("prop", B * N)
    add("pmean", B)
    add("bias", 8)
    return offs, row, width, Np


def pack_model(prop, params, batch):
    """Fold the static (normalized) graph + all weights/biases into one slab."""
    N = prop.shape[0]
    T, Gh = params["w1"].shape
    Ne = params["w2"].shape[1]
    H = params["whh"].shape[0]
    Ee = params["w3"].shape[1]
    C = params["w4"].shape[1]
    B = batch
    offs, rows, width, Np = _slab_layout(N, T, H, Gh, Ne, Ee, C, B)

    slab = jnp.zeros((rows, width), jnp.float32)

    def put(slab, name, arr):
        arr = jnp.asarray(arr, jnp.float32)
        return slab.at[offs[name]:offs[name] + arr.shape[0], :arr.shape[1]].set(arr)

    slab = put(slab, "wih", params["wih"])
    slab = put(slab, "whh", params["whh"])
    slab = put(slab, "w1", params["w1"])
    slab = put(slab, "w2", params["w2"])
    slab = put(slab, "w3a", params["w3"][:H])          # multiplies h_last
    slab = put(slab, "w3b", params["w3"][H:])          # multiplies graph_vec
    slab = put(slab, "w4", params["w4"])

    prop = jnp.asarray(prop, jnp.float32)
    prop_bd = jnp.kron(jnp.eye(B, dtype=jnp.float32), prop)        # [B*N, B*N]
    p_bar = jnp.mean(prop, axis=0, keepdims=True)                  # [1, N]
    p_mean = jnp.kron(jnp.eye(B, dtype=jnp.float32), p_bar)        # [B, B*N]
    slab = put(slab, "prop", prop_bd)
    slab = put(slab, "pmean", p_mean)

    bias_block = jnp.zeros((8, width), jnp.float32)
    bias_block = bias_block.at[0, :4 * H].set(params["blstm"][0])
    bias_block = bias_block.at[1, :Gh].set(params["b1"][0])
    bias_block = bias_block.at[2, :Ne].set(params["b2"][0])
    bias_block = bias_block.at[3, :Ee].set(params["b3"][0])
    bias_block = bias_block.at[4, :C].set(params["b4"][0])
    slab = put(slab, "bias", bias_block)

    dims = dict(N=N, Np=Np, T=T, H=H, Gh=Gh, Ne=Ne, Ee=Ee, C=C, B=B,
                rows=rows, width=width)
    return slab, offs, dims


# ----------------------------------------------------------------------------
# Kernel
# ----------------------------------------------------------------------------
def _make_kernel(offs, dims):
    N, Np, T, H = dims["N"], dims["Np"], dims["T"], dims["H"]
    Gh, Ne, Ee, C, B = dims["Gh"], dims["Ne"], dims["Ee"], dims["C"], dims["B"]
    ob = offs["bias"]

    def kernel(xg_ref, xt_ref, w_ref, out_ref):
        # ---- parameter slices from the single resident slab (static offsets) ----
        wih = w_ref[offs["wih"]:offs["wih"] + Np, :4 * H]          # [Np, 4H]
        whh = w_ref[offs["whh"]:offs["whh"] + H, :4 * H]           # [H, 4H]
        w1 = w_ref[offs["w1"]:offs["w1"] + T, :Gh]                 # [T, Gh]
        w2 = w_ref[offs["w2"]:offs["w2"] + Gh, :Ne]                # [Gh, Ne]
        w3a = w_ref[offs["w3a"]:offs["w3a"] + H, :Ee]              # [H, Ee]
        w3b = w_ref[offs["w3b"]:offs["w3b"] + Ne, :Ee]             # [Ne, Ee]
        w4 = w_ref[offs["w4"]:offs["w4"] + Ee, :C]                 # [Ee, C]
        prop_bd = w_ref[offs["prop"]:offs["prop"] + B * N, :B * N] # [B*N, B*N]
        p_mean = w_ref[offs["pmean"]:offs["pmean"] + B, :B * N]    # [B, B*N]
        blstm = w_ref[ob + 0:ob + 1, :4 * H]
        b1 = w_ref[ob + 1:ob + 2, :Gh]
        b2 = w_ref[ob + 2:ob + 3, :Ne]
        b3 = w_ref[ob + 3:ob + 4, :Ee]
        b4 = w_ref[ob + 4:ob + 5, :C]

        # ---- LSTM over T steps, batch B packed into the sublane dimension ----
        # Input projection for all (t, b) at once (off the serial chain):
        # one [T*B, Np] x [Np, 4H] matmul.  bf16 operands => single-pass MXU.
        xt = xt_ref[...]                                           # [T*B, Np] f32
        gates_x = jnp.dot(xt.astype(jnp.bfloat16), wih.astype(jnp.bfloat16),
                          preferred_element_type=jnp.float32) + blstm   # [T*B, 4H]
        whh_bf = whh.astype(jnp.bfloat16)

        h = jnp.zeros((B, H), jnp.float32)
        c = jnp.zeros((B, H), jnp.float32)
        # Fully unrolled recurrence: static 8-aligned slices, full-vreg EUP ops,
        # per-step matmul is [B, H] x [H, 4H] with B=8 rows filling the sublanes.
        for t in range(T):
            g = gates_x[t * B:(t + 1) * B, :] + jnp.dot(
                h.astype(jnp.bfloat16), whh_bf,
                preferred_element_type=jnp.float32)                # [B, 4H]
            sig = jax.nn.sigmoid(g)        # one full-vreg EUP op (i, f, _, o)
            tg = jnp.tanh(g)               # one full-vreg EUP op (gate g)
            c = sig[:, H:2 * H] * c + sig[:, 0:H] * tg[:, 2 * H:3 * H]
            h = sig[:, 3 * H:4 * H] * jnp.tanh(c)
        h_last = h                                                  # [B, H]

        # ---- GCN stack: shared graph -> block-diagonal propagation ----------
        xg = xg_ref[...]                                            # [B*N, T]

        def gcn(hin, w, bb):
            hw = jnp.dot(hin, w, preferred_element_type=jnp.float32)
            return jnp.dot(prop_bd, hw, preferred_element_type=jnp.float32) + bb

        g1 = jax.nn.relu(gcn(xg, w1, b1))      # conv1 + relu (dropout = identity)
        g2 = jax.nn.relu(gcn(g1, w2, b2))      # conv2 + relu
        # conv2 applied again + per-sample node-mean, fused algebraically.
        graph_vec = jnp.dot(
            p_mean, jnp.dot(g2, w2, preferred_element_type=jnp.float32),
            preferred_element_type=jnp.float32) + b2                # [B, Ne]

        # ---- heads (concat replaced by two summed dots) + log_softmax -------
        ev = jax.nn.relu(
            jnp.dot(h_last, w3a, preferred_element_type=jnp.float32)
            + jnp.dot(graph_vec, w3b, preferred_element_type=jnp.float32) + b3)
        cls = jnp.dot(ev, w4, preferred_element_type=jnp.float32) + b4   # [B, C]
        m = jnp.max(cls, axis=1, keepdims=True)
        lse = jnp.log(jnp.sum(jnp.exp(cls - m), axis=1, keepdims=True)) + m
        out_ref[...] = cls - lse

    return kernel


def make_forward(offs, dims):
    kernel = _make_kernel(offs, dims)
    B, N, Np, T, C = dims["B"], dims["N"], dims["Np"], dims["T"], dims["C"]
    vmem = pl.BlockSpec(memory_space=pltpu.MemorySpace.VMEM)

    def forward(w_slab, node_att):
        """w_slab: packed params/graph; node_att: [B, N, T] (shared static graph)."""
        x = node_att.astype(jnp.float32)
        x_flat = x.reshape(B * N, T)                          # GCN input, node-major
        xt = jnp.transpose(x, (2, 0, 1)).reshape(T * B, N)    # LSTM input, time-major
        xt = jnp.pad(xt, ((0, 0), (0, Np - N)))               # pad features to 8

        # Single gridless invocation: whole model resident in VMEM, 3 input DMAs.
        return pl.pallas_call(
            kernel,
            out_shape=jax.ShapeDtypeStruct((B, C), jnp.float32),
            in_specs=[vmem, vmem, vmem],
            out_specs=vmem,
        )(x_flat, xt, w_slab)

    return forward


# ----------------------------------------------------------------------------
# Graph normalization (replaces build_edge_index_tensor + PyG GCN norm);
# hoisted out of the jitted forward since the graph is static.
# ----------------------------------------------------------------------------
def normalize_adjacency(adj_mat):
    """prop = (D^-1/2 (A + I) D^-1/2)^T so that conv(X) = prop @ (X W) + b."""
    n = adj_mat.shape[0]
    eye = jnp.eye(n, dtype=jnp.float32)
    a_hat = adj_mat.astype(jnp.float32) * (1.0 - eye) + eye
    deg = jnp.sum(a_hat, axis=0)
    dinv = jnp.where(deg > 0, lax.rsqrt(deg), 0.0)
    norm_adj = dinv[:, None] * a_hat * dinv[None, :]
    return norm_adj.T


# ----------------------------------------------------------------------------
# Pure-JAX per-sample reference (mirrors the PyTorch forward, eval mode).
# LSTM matmul operands mirrored in bf16 to match the kernel's MXU precision.
# ----------------------------------------------------------------------------
def reference_forward(prop, node_att_1, params):
    x = node_att_1.astype(jnp.float32)                     # [N, T]
    xt = x.T                                               # [T, N]
    H = params["whh"].shape[0]
    T = xt.shape[0]
    gates_x = jnp.dot(xt.astype(jnp.bfloat16), params["wih"].astype(jnp.bfloat16),
                      preferred_element_type=jnp.float32) + params["blstm"]
    whh_bf = params["whh"].astype(jnp.bfloat16)
    h = jnp.zeros((1, H), jnp.float32)
    c = jnp.zeros((1, H), jnp.float32)
    for t in range(T):
        g = gates_x[t:t + 1, :] + jnp.dot(h.astype(jnp.bfloat16), whh_bf,
                                          preferred_element_type=jnp.float32)
        i_g = jax.nn.sigmoid(g[:, 0:H])
        f_g = jax.nn.sigmoid(g[:, H:2 * H])
        g_g = jnp.tanh(g[:, 2 * H:3 * H])
        o_g = jax.nn.sigmoid(g[:, 3 * H:4 * H])
        c = f_g * c + i_g * g_g
        h = o_g * jnp.tanh(c)

    def gcn(hin, w, bb):
        return jnp.dot(prop, jnp.dot(hin, w)) + bb

    g1 = jax.nn.relu(gcn(x, params["w1"], params["b1"]))
    g2 = jax.nn.relu(gcn(g1, params["w2"], params["b2"]))
    g3 = gcn(g2, params["w2"], params["b2"])
    graph_vec = jnp.mean(g3, axis=0, keepdims=True)
    sg = jnp.concatenate([h, graph_vec], axis=1)
    ev = jax.nn.relu(jnp.dot(sg, params["w3"]) + params["b3"])
    cls = jnp.dot(ev, params["w4"]) + params["b4"]
    return jax.nn.log_softmax(cls, axis=1)


# ----------------------------------------------------------------------------
# Parameter init (matches nn.LSTM / nn.Linear uniform bounds; GCN init is
# fidelity-only, not numerically critical).
# ----------------------------------------------------------------------------
def init_params(key, num_nodes, input_dims, seq_emb, gcn_hidden, node_emb,
                graph_emb, event_emb, num_classes):
    assert graph_emb == node_emb, "graph_emb_dims must equal node_emb_dims"
    ks = jax.random.split(key, 12)

    def u(k, shape, fan_in):
        bound = 1.0 / (float(fan_in) ** 0.5)
        return jax.random.uniform(k, shape, jnp.float32, -bound, bound)

    H = seq_emb
    p = {}
    # nn.LSTM(num_nodes, seq_emb): stored transposed ([in, 4H]), gate order i,f,g,o
    p["wih"] = u(ks[0], (num_nodes, 4 * H), H)
    p["whh"] = u(ks[1], (H, 4 * H), H)
    p["blstm"] = u(ks[2], (1, 4 * H), H) + u(ks[3], (1, 4 * H), H)   # b_ih + b_hh
    p["w1"] = u(ks[4], (input_dims, gcn_hidden), input_dims)
    p["b1"] = u(ks[5], (1, gcn_hidden), input_dims)
    p["w2"] = u(ks[6], (gcn_hidden, node_emb), gcn_hidden)
    p["b2"] = u(ks[7], (1, node_emb), gcn_hidden)
    p["w3"] = u(ks[8], (seq_emb + graph_emb, event_emb), seq_emb + graph_emb)
    p["b3"] = u(ks[9], (1, event_emb), seq_emb + graph_emb)
    p["w4"] = u(ks[10], (event_emb, num_classes), event_emb)
    p["b4"] = u(ks[11], (1, num_classes), event_emb)
    return p


if __name__ == "__main__":
    num_nodes = 6
    input_dims = 16          # = LSTM sequence length T
    sequence_emb_dims = 32
    gcn_hidden_dims = 32
    node_emb_dims = 32
    graph_emb_dims = 32      # must equal node_emb_dims
    event_emb_dims = 32
    num_classes = 4
    batch = 8                # independent samples sharing the static graph

    key = jax.random.PRNGKey(0)
    k_adj, k_x, k_p = jax.random.split(key, 3)

    # deterministic symmetric 0/1 adjacency, zero diagonal
    a = (jax.random.uniform(k_adj, (num_nodes, num_nodes)) > 0.5).astype(jnp.float32)
    adj_mat = jnp.maximum(a, a.T) * (1.0 - jnp.eye(num_nodes, dtype=jnp.float32))
    node_att = jax.random.normal(k_x, (batch, num_nodes, input_dims), jnp.float32)

    params = init_params(k_p, num_nodes, input_dims, sequence_emb_dims,
                         gcn_hidden_dims, node_emb_dims, graph_emb_dims,
                         event_emb_dims, num_classes)

    # Static graph: normalize once, fold into the packed parameter slab.
    prop = normalize_adjacency(adj_mat)
    w_slab, offs, dims = pack_model(prop, params, batch)
    w_slab = jax.block_until_ready(w_slab)

    forward = make_forward(offs, dims)
    fwd = jax.jit(forward)
    class_scores = jax.block_until_ready(fwd(w_slab, node_att))

    assert class_scores.shape == (batch, num_classes)
    assert bool(jnp.all(jnp.isfinite(class_scores)))
    prob_sums = jnp.sum(jnp.exp(class_scores), axis=1)
    assert bool(jnp.all(jnp.abs(prob_sums - 1.0) < 1e-4))

    # validate against the per-sample pure-JAX reference
    ref = jnp.concatenate(
        [reference_forward(prop, node_att[b], params) for b in range(batch)], axis=0)
    max_err = float(jnp.max(jnp.abs(class_scores - ref)))
    assert max_err < 2e-2, f"mismatch vs reference: {max_err}"

    print("KERNEL_OK")
</pallas_src>

<mosaic_0001>
module attributes {stable_mosaic.version = 11 : i64} {
  func.func @kernel(%arg0: memref<48x16xf32, #tpu.memory_space<vmem>>, %arg1: memref<128x8xf32, #tpu.memory_space<vmem>>, %arg2: memref<248x128xf32, #tpu.memory_space<vmem>>, %arg3: memref<8x4xf32, #tpu.memory_space<vmem>>) attributes {dimension_semantics = [], scalar_prefetch = 0 : i64, scratch_operands = 0 : i64, tpu.core_type = #tpu.core_type<tc>} {
    %c0 = arith.constant 0 : index
    %c0_0 = arith.constant 0 : index
    %0 = vector.load %arg2[%c0, %c0_0] : memref<248x128xf32, #tpu.memory_space<vmem>>, vector<8x128xf32>
    %c8 = arith.constant 8 : index
    %c0_1 = arith.constant 0 : index
    %1 = vector.load %arg2[%c8, %c0_1] : memref<248x128xf32, #tpu.memory_space<vmem>>, vector<32x128xf32>
    %c40 = arith.constant 40 : index
    %c0_2 = arith.constant 0 : index
    %2 = vector.load %arg2[%c40, %c0_2] : memref<248x128xf32, #tpu.memory_space<vmem>>, vector<16x32xf32>
    %c56 = arith.constant 56 : index
    %c0_3 = arith.constant 0 : index
    %3 = vector.load %arg2[%c56, %c0_3] : memref<248x128xf32, #tpu.memory_space<vmem>>, vector<32x32xf32>
    %c88 = arith.constant 88 : index
    %c0_4 = arith.constant 0 : index
    %4 = vector.load %arg2[%c88, %c0_4] : memref<248x128xf32, #tpu.memory_space<vmem>>, vector<32x32xf32>
    %c120 = arith.constant 120 : index
    %c0_5 = arith.constant 0 : index
    %5 = vector.load %arg2[%c120, %c0_5] : memref<248x128xf32, #tpu.memory_space<vmem>>, vector<32x32xf32>
    %c152 = arith.constant 152 : index
    %c0_6 = arith.constant 0 : index
    %6 = vector.load %arg2[%c152, %c0_6] : memref<248x128xf32, #tpu.memory_space<vmem>>, vector<32x4xf32>
    %c184 = arith.constant 184 : index
    %c0_7 = arith.constant 0 : index
    %7 = vector.load %arg2[%c184, %c0_7] : memref<248x128xf32, #tpu.memory_space<vmem>>, vector<48x48xf32>
    %c232 = arith.constant 232 : index
    %c0_8 = arith.constant 0 : index
    %8 = vector.load %arg2[%c232, %c0_8] : memref<248x128xf32, #tpu.memory_space<vmem>>, vector<8x48xf32>
    %c240 = arith.constant 240 : index
    %c0_9 = arith.constant 0 : index
    %9 = vector.load %arg2[%c240, %c0_9] : memref<248x128xf32, #tpu.memory_space<vmem>>, vector<1x128xf32>
    %c241 = arith.constant 241 : index
    %c0_10 = arith.constant 0 : index
    %10 = vector.load %arg2[%c241, %c0_10] : memref<248x128xf32, #tpu.memory_space<vmem>>, vector<1x32xf32>
    %c242 = arith.constant 242 : index
    %c0_11 = arith.constant 0 : index
    %11 = vector.load %arg2[%c242, %c0_11] : memref<248x128xf32, #tpu.memory_space<vmem>>, vector<1x32xf32>
    %c243 = arith.constant 243 : index
    %c0_12 = arith.constant 0 : index
    %12 = vector.load %arg2[%c243, %c0_12] : memref<248x128xf32, #tpu.memory_space<vmem>>, vector<1x32xf32>
    %c244 = arith.constant 244 : index
    %c0_13 = arith.constant 0 : index
    %13 = vector.load %arg2[%c244, %c0_13] : memref<248x128xf32, #tpu.memory_space<vmem>>, vector<1x4xf32>
    %c0_14 = arith.constant 0 : index
    %c0_15 = arith.constant 0 : index
    %14 = vector.load %arg1[%c0_14, %c0_15] : memref<128x8xf32, #tpu.memory_space<vmem>>, vector<128x8xf32>
    %15 = arith.truncf %14 : vector<128x8xf32> to vector<128x8xbf16>
    %16 = arith.truncf %0 : vector<8x128xf32> to vector<8x128xbf16>
    %cst = arith.constant dense<0.000000e+00> : vector<128x128xf32>
    %17 = tpu.matmul %15, %16, %cst {dimension_numbers = #tpu.dot_dimension_numbers<[1], [0], [0], [1], [0, 0, 1, 1], [], []>} : vector<128x8xbf16>, vector<8x128xbf16>, vector<128x128xf32> -> vector<128x128xf32>
    %18 = vector.broadcast %9 : vector<1x128xf32> to vector<128x128xf32>
    %19 = arith.addf %17, %18 : vector<128x128xf32>
    %20 = arith.truncf %1 : vector<32x128xf32> to vector<32x128xbf16>
    %cst_16 = arith.constant 0.000000e+00 : f32
    %21 = vector.broadcast %cst_16 : f32 to vector<8x32xf32>
    %cst_17 = arith.constant 0.000000e+00 : f32
    %22 = vector.broadcast %cst_17 : f32 to vector<8x32xf32>
    %23 = vector.extract_strided_slice %19 {offsets = [0, 0], sizes = [8, 128], strides = [1, 1]} : vector<128x128xf32> to vector<8x128xf32>
    %24 = arith.truncf %21 : vector<8x32xf32> to vector<8x32xbf16>
    %cst_18 = arith.constant dense<0.000000e+00> : vector<8x128xf32>
    %25 = tpu.matmul %24, %20, %cst_18 {dimension_numbers = #tpu.dot_dimension_numbers<[1], [0], [0], [1], [0, 0, 1, 1], [], []>} : vector<8x32xbf16>, vector<32x128xbf16>, vector<8x128xf32> -> vector<8x128xf32>
    %26 = arith.addf %23, %25 : vector<8x128xf32>
    %27 = arith.negf %26 : vector<8x128xf32>
    %28 = math.exp %27 : vector<8x128xf32>
    %cst_19 = arith.constant 1.000000e+00 : f32
    %29 = vector.broadcast %cst_19 : f32 to vector<8x128xf32>
    %30 = arith.addf %29, %28 : vector<8x128xf32>
    %31 = arith.divf %29, %30 : vector<8x128xf32>
    %32 = math.tanh %26 : vector<8x128xf32>
    %33 = vector.extract_strided_slice %31 {offsets = [0, 32], sizes = [8, 32], strides = [1, 1]} : vector<8x128xf32> to vector<8x32xf32>
    %34 = arith.mulf %33, %22 : vector<8x32xf32>
    %35 = vector.extract_strided_slice %31 {offsets = [0, 0], sizes = [8, 32], strides = [1, 1]} : vector<8x128xf32> to vector<8x32xf32>
    %36 = vector.extract_strided_slice %32 {offsets = [0, 64], sizes = [8, 32], strides = [1, 1]} : vector<8x128xf32> to vector<8x32xf32>
    %37 = arith.mulf %35, %36 : vector<8x32xf32>
    %38 = arith.addf %34, %37 : vector<8x32xf32>
    %39 = vector.extract_strided_slice %31 {offsets = [0, 96], sizes = [8, 32], strides = [1, 1]} : vector<8x128xf32> to vector<8x32xf32>
    %40 = math.tanh %38 : vector<8x32xf32>
    %41 = arith.mulf %39, %40 : vector<8x32xf32>
    %42 = vector.extract_strided_slice %19 {offsets = [8, 0], sizes = [8, 128], strides = [1, 1]} : vector<128x128xf32> to vector<8x128xf32>
    %43 = arith.truncf %41 : vector<8x32xf32> to vector<8x32xbf16>
    %cst_20 = arith.constant dense<0.000000e+00> : vector<8x128xf32>
    %44 = tpu.matmul %43, %20, %cst_20 {dimension_numbers = #tpu.dot_dimension_numbers<[1], [0], [0], [1], [0, 0, 1, 1], [], []>} : vector<8x32xbf16>, vector<32x128xbf16>, vector<8x128xf32> -> vector<8x128xf32>
    %45 = arith.addf %42, %44 : vector<8x128xf32>
    %46 = arith.negf %45 : vector<8x128xf32>
    %47 = math.exp %46 : vector<8x128xf32>
    %cst_21 = arith.constant 1.000000e+00 : f32
    %48 = vector.broadcast %cst_21 : f32 to vector<8x128xf32>
    %49 = arith.addf %48, %47 : vector<8x128xf32>
    %50 = arith.divf %48, %49 : vector<8x128xf32>
    %51 = math.tanh %45 : vector<8x128xf32>
    %52 = vector.extract_strided_slice %50 {offsets = [0, 32], sizes = [8, 32], strides = [1, 1]} : vector<8x128xf32> to vector<8x32xf32>
    %53 = arith.mulf %52, %38 : vector<8x32xf32>
    %54 = vector.extract_strided_slice %50 {offsets = [0, 0], sizes = [8, 32], strides = [1, 1]} : vector<8x128xf32> to vector<8x32xf32>
    %55 = vector.extract_strided_slice %51 {offsets = [0, 64], sizes = [8, 32], strides = [1, 1]} : vector<8x128xf32> to vector<8x32xf32>
    %56 = arith.mulf %54, %55 : vector<8x32xf32>
    %57 = arith.addf %53, %56 : vector<8x32xf32>
    %58 = vector.extract_strided_slice %50 {offsets = [0, 96], sizes = [8, 32], strides = [1, 1]} : vector<8x128xf32> to vector<8x32xf32>
    %59 = math.tanh %57 : vector<8x32xf32>
    %60 = arith.mulf %58, %59 : vector<8x32xf32>
    %61 = vector.extract_strided_slice %19 {offsets = [16, 0], sizes = [8, 128], strides = [1, 1]} : vector<128x128xf32> to vector<8x128xf32>
    %62 = arith.truncf %60 : vector<8x32xf32> to vector<8x32xbf16>
    %cst_22 = arith.constant dense<0.000000e+00> : vector<8x128xf32>
    %63 = tpu.matmul %62, %20, %cst_22 {dimension_numbers = #tpu.dot_dimension_numbers<[1], [0], [0], [1], [0, 0, 1, 1], [], []>} : vector<8x32xbf16>, vector<32x128xbf16>, vector<8x128xf32> -> vector<8x128xf32>
    %64 = arith.addf %61, %63 : vector<8x128xf32>
    %65 = arith.negf %64 : vector<8x128xf32>
    %66 = math.exp %65 : vector<8x128xf32>
    %cst_23 = arith.constant 1.000000e+00 : f32
    %67 = vector.broadcast %cst_23 : f32 to vector<8x128xf32>
    %68 = arith.addf %67, %66 : vector<8x128xf32>
    %69 = arith.divf %67, %68 : vector<8x128xf32>
    %70 = math.tanh %64 : vector<8x128xf32>
    %71 = vector.extract_strided_slice %69 {offsets = [0, 32], sizes = [8, 32], strides = [1, 1]} : vector<8x128xf32> to vector<8x32xf32>
    %72 = arith.mulf %71, %57 : vector<8x32xf32>
    %73 = vector.extract_strided_slice %69 {offsets = [0, 0], sizes = [8, 32], strides = [1, 1]} : vector<8x128xf32> to vector<8x32xf32>
    %74 = vector.extract_strided_slice %70 {offsets = [0, 64], sizes = [8, 32], strides = [1, 1]} : vector<8x128xf32> to vector<8x32xf32>
    %75 = arith.mulf %73, %74 : vector<8x32xf32>
    %76 = arith.addf %72, %75 : vector<8x32xf32>
    %77 = vector.extract_strided_slice %69 {offsets = [0, 96], sizes = [8, 32], strides = [1, 1]} : vector<8x128xf32> to vector<8x32xf32>
    %78 = math.tanh %76 : vector<8x32xf32>
    %79 = arith.mulf %77, %78 : vector<8x32xf32>
    %80 = vector.extract_strided_slice %19 {offsets = [24, 0], sizes = [8, 128], strides = [1, 1]} : vector<128x128xf32> to vector<8x128xf32>
    %81 = arith.truncf %79 : vector<8x32xf32> to vector<8x32xbf16>
    %cst_24 = arith.constant dense<0.000000e+00> : vector<8x128xf32>
    %82 = tpu.matmul %81, %20, %cst_24 {dimension_numbers = #tpu.dot_dimension_numbers<[1], [0], [0], [1], [0, 0, 1, 1], [], []>} : vector<8x32xbf16>, vector<32x128xbf16>, vector<8x128xf32> -> vector<8x128xf32>
    %83 = arith.addf %80, %82 : vector<8x128xf32>
    %84 = arith.negf %83 : vector<8x128xf32>
    %85 = math.exp %84 : vector<8x128xf32>
    %cst_25 = arith.constant 1.000000e+00 : f32
    %86 = vector.broadcast %cst_25 : f32 to vector<8x128xf32>
    %87 = arith.addf %86, %85 : vector<8x128xf32>
    %88 = arith.divf %86, %87 : vector<8x128xf32>
    %89 = math.tanh %83 : vector<8x128xf32>
    %90 = vector.extract_strided_slice %88 {offsets = [0, 32], sizes = [8, 32], strides = [1, 1]} : vector<8x128xf32> to vector<8x32xf32>
    %91 = arith.mulf %90, %76 : vector<8x32xf32>
    %92 = vector.extract_strided_slice %88 {offsets = [0, 0], sizes = [8, 32], strides = [1, 1]} : vector<8x128xf32> to vector<8x32xf32>
    %93 = vector.extract_strided_slice %89 {offsets = [0, 64], sizes = [8, 32], strides = [1, 1]} : vector<8x128xf32> to vector<8x32xf32>
    %94 = arith.mulf %92, %93 : vector<8x32xf32>
    %95 = arith.addf %91, %94 : vector<8x32xf32>
    %96 = vector.extract_strided_slice %88 {offsets = [0, 96], sizes = [8, 32], strides = [1, 1]} : vector<8x128xf32> to vector<8x32xf32>
    %97 = math.tanh %95 : vector<8x32xf32>
    %98 = arith.mulf %96, %97 : vector<8x32xf32>
    %99 = vector.extract_strided_slice %19 {offsets = [32, 0], sizes = [8, 128], strides = [1, 1]} : vector<128x128xf32> to vector<8x128xf32>
    %100 = arith.truncf %98 : vector<8x32xf32> to vector<8x32xbf16>
    %cst_26 = arith.constant dense<0.000000e+00> : vector<8x128xf32>
    %101 = tpu.matmul %100, %20, %cst_26 {dimension_numbers = #tpu.dot_dimension_numbers<[1], [0], [0], [1], [0, 0, 1, 1], [], []>} : vector<8x32xbf16>, vector<32x128xbf16>, vector<8x128xf32> -> vector<8x128xf32>
    %102 = arith.addf %99, %101 : vector<8x128xf32>
    %103 = arith.negf %102 : vector<8x128xf32>
    %104 = math.exp %103 : vector<8x128xf32>
    %cst_27 = arith.constant 1.000000e+00 : f32
    %105 = vector.broadcast %cst_27 : f32 to vector<8x128xf32>
    %106 = arith.addf %105, %104 : vector<8x128xf32>
    %107 = arith.divf %105, %106 : vector<8x128xf32>
    %108 = math.tanh %102 : vector<8x128xf32>
    %109 = vector.extract_strided_slice %107 {offsets = [0, 32], sizes = [8, 32], strides = [1, 1]} : vector<8x128xf32> to vector<8x32xf32>
    %110 = arith.mulf %109, %95 : vector<8x32xf32>
    %111 = vector.extract_strided_slice %107 {offsets = [0, 0], sizes = [8, 32], strides = [1, 1]} : vector<8x128xf32> to vector<8x32xf32>
    %112 = vector.extract_strided_slice %108 {offsets = [0, 64], sizes = [8, 32], strides = [1, 1]} : vector<8x128xf32> to vector<8x32xf32>
    %113 = arith.mulf %111, %112 : vector<8x32xf32>
    %114 = arith.addf %110, %113 : vector<8x32xf32>
    %115 = vector.extract_strided_slice %107 {offsets = [0, 96], sizes = [8, 32], strides = [1, 1]} : vector<8x128xf32> to vector<8x32xf32>
    %116 = math.tanh %114 : vector<8x32xf32>
    %117 = arith.mulf %115, %116 : vector<8x32xf32>
    %118 = vector.extract_strided_slice %19 {offsets = [40, 0], sizes = [8, 128], strides = [1, 1]} : vector<128x128xf32> to vector<8x128xf32>
    %119 = arith.truncf %117 : vector<8x32xf32> to vector<8x32xbf16>
    %cst_28 = arith.constant dense<0.000000e+00> : vector<8x128xf32>
    %120 = tpu.matmul %119, %20, %cst_28 {dimension_numbers = #tpu.dot_dimension_numbers<[1], [0], [0], [1], [0, 0, 1, 1], [], []>} : vector<8x32xbf16>, vector<32x128xbf16>, vector<8x128xf32> -> vector<8x128xf32>
    %121 = arith.addf %118, %120 : vector<8x128xf32>
    %122 = arith.negf %121 : vector<8x128xf32>
    %123 = math.exp %122 : vector<8x128xf32>
    %cst_29 = arith.constant 1.000000e+00 : f32
    %124 = vector.broadcast %cst_29 : f32 to vector<8x128xf32>
    %125 = arith.addf %124, %123 : vector<8x128xf32>
    %126 = arith.divf %124, %125 : vector<8x128xf32>
    %127 = math.tanh %121 : vector<8x128xf32>
    %128 = vector.extract_strided_slice %126 {offsets = [0, 32], sizes = [8, 32], strides = [1, 1]} : vector<8x128xf32> to vector<8x32xf32>
    %129 = arith.mulf %128, %114 : vector<8x32xf32>
    %130 = vector.extract_strided_slice %126 {offsets = [0, 0], sizes = [8, 32], strides = [1, 1]} : vector<8x128xf32> to vector<8x32xf32>
    %131 = vector.extract_strided_slice %127 {offsets = [0, 64], sizes = [8, 32], strides = [1, 1]} : vector<8x128xf32> to vector<8x32xf32>
    %132 = arith.mulf %130, %131 : vector<8x32xf32>
    %133 = arith.addf %129, %132 : vector<8x32xf32>
    %134 = vector.extract_strided_slice %126 {offsets = [0, 96], sizes = [8, 32], strides = [1, 1]} : vector<8x128xf32> to vector<8x32xf32>
    %135 = math.tanh %133 : vector<8x32xf32>
    %136 = arith.mulf %134, %135 : vector<8x32xf32>
    %137 = vector.extract_strided_slice %19 {offsets = [48, 0], sizes = [8, 128], strides = [1, 1]} : vector<128x128xf32> to vector<8x128xf32>
    %138 = arith.truncf %136 : vector<8x32xf32> to vector<8x32xbf16>
    %cst_30 = arith.constant dense<0.000000e+00> : vector<8x128xf32>
    %139 = tpu.matmul %138, %20, %cst_30 {dimension_numbers = #tpu.dot_dimension_numbers<[1], [0], [0], [1], [0, 0, 1, 1], [], []>} : vector<8x32xbf16>, vector<32x128xbf16>, vector<8x128xf32> -> vector<8x128xf32>
    %140 = arith.addf %137, %139 : vector<8x128xf32>
    %141 = arith.negf %140 : vector<8x128xf32>
    %142 = math.exp %141 : vector<8x128xf32>
    %cst_31 = arith.constant 1.000000e+00 : f32
    %143 = vector.broadcast %cst_31 : f32 to vector<8x128xf32>
    %144 = arith.addf %143, %142 : vector<8x128xf32>
    %145 = arith.divf %143, %144 : vector<8x128xf32>
    %146 = math.tanh %140 : vector<8x128xf32>
    %147 = vector.extract_strided_slice %145 {offsets = [0, 32], sizes = [8, 32], strides = [1, 1]} : vector<8x128xf32> to vector<8x32xf32>
    %148 = arith.mulf %147, %133 : vector<8x32xf32>
    %149 = vector.extract_strided_slice %145 {offsets = [0, 0], sizes = [8, 32], strides = [1, 1]} : vector<8x128xf32> to vector<8x32xf32>
    %150 = vector.extract_strided_slice %146 {offsets = [0, 64], sizes = [8, 32], strides = [1, 1]} : vector<8x128xf32> to vector<8x32xf32>
    %151 = arith.mulf %149, %150 : vector<8x32xf32>
    %152 = arith.addf %148, %151 : vector<8x32xf32>
    %153 = vector.extract_strided_slice %145 {offsets = [0, 96], sizes = [8, 32], strides = [1, 1]} : vector<8x128xf32> to vector<8x32xf32>
    %154 = math.tanh %152 : vector<8x32xf32>
    %155 = arith.mulf %153, %154 : vector<8x32xf32>
    %156 = vector.extract_strided_slice %19 {offsets = [56, 0], sizes = [8, 128], strides = [1, 1]} : vector<128x128xf32> to vector<8x128xf32>
    %157 = arith.truncf %155 : vector<8x32xf32> to vector<8x32xbf16>
    %cst_32 = arith.constant dense<0.000000e+00> : vector<8x128xf32>
    %158 = tpu.matmul %157, %20, %cst_32 {dimension_numbers = #tpu.dot_dimension_numbers<[1], [0], [0], [1], [0, 0, 1, 1], [], []>} : vector<8x32xbf16>, vector<32x128xbf16>, vector<8x128xf32> -> vector<8x128xf32>
    %159 = arith.addf %156, %158 : vector<8x128xf32>
    %160 = arith.negf %159 : vector<8x128xf32>
    %161 = math.exp %160 : vector<8x128xf32>
    %cst_33 = arith.constant 1.000000e+00 : f32
    %162 = vector.broadcast %cst_33 : f32 to vector<8x128xf32>
    %163 = arith.addf %162, %161 : vector<8x128xf32>
    %164 = arith.divf %162, %163 : vector<8x128xf32>
    %165 = math.tanh %159 : vector<8x128xf32>
    %166 = vector.extract_strided_slice %164 {offsets = [0, 32], sizes = [8, 32], strides = [1, 1]} : vector<8x128xf32> to vector<8x32xf32>
    %167 = arith.mulf %166, %152 : vector<8x32xf32>
    %168 = vector.extract_strided_slice %164 {offsets = [0, 0], sizes = [8, 32], strides = [1, 1]} : vector<8x128xf32> to vector<8x32xf32>
    %169 = vector.extract_strided_slice %165 {offsets = [0, 64], sizes = [8, 32], strides = [1, 1]} : vector<8x128xf32> to vector<8x32xf32>
    %170 = arith.mulf %168, %169 : vector<8x32xf32>
    %171 = arith.addf %167, %170 : vector<8x32xf32>
    %172 = vector.extract_strided_slice %164 {offsets = [0, 96], sizes = [8, 32], strides = [1, 1]} : vector<8x128xf32> to vector<8x32xf32>
    %173 = math.tanh %171 : vector<8x32xf32>
    %174 = arith.mulf %172, %173 : vector<8x32xf32>
    %175 = vector.extract_strided_slice %19 {offsets = [64, 0], sizes = [8, 128], strides = [1, 1]} : vector<128x128xf32> to vector<8x128xf32>
    %176 = arith.truncf %174 : vector<8x32xf32> to vector<8x32xbf16>
    %cst_34 = arith.constant dense<0.000000e+00> : vector<8x128xf32>
    %177 = tpu.matmul %176, %20, %cst_34 {dimension_numbers = #tpu.dot_dimension_numbers<[1], [0], [0], [1], [0, 0, 1, 1], [], []>} : vector<8x32xbf16>, vector<32x128xbf16>, vector<8x128xf32> -> vector<8x128xf32>
    %178 = arith.addf %175, %177 : vector<8x128xf32>
    %179 = arith.negf %178 : vector<8x128xf32>
    %180 = math.exp %179 : vector<8x128xf32>
    %cst_35 = arith.constant 1.000000e+00 : f32
    %181 = vector.broadcast %cst_35 : f32 to vector<8x128xf32>
    %182 = arith.addf %181, %180 : vector<8x128xf32>
    %183 = arith.divf %181, %182 : vector<8x128xf32>
    %184 = math.tanh %178 : vector<8x128xf32>
    %185 = vector.extract_strided_slice %183 {offsets = [0, 32], sizes = [8, 32], strides = [1, 1]} : vector<8x128xf32> to vector<8x32xf32>
    %186 = arith.mulf %185, %171 : vector<8x32xf32>
    %187 = vector.extract_strided_slice %183 {offsets = [0, 0], sizes = [8, 32], strides = [1, 1]} : vector<8x128xf32> to vector<8x32xf32>
    %188 = vector.extract_strided_slice %184 {offsets = [0, 64], sizes = [8, 32], strides = [1, 1]} : vector<8x128xf32> to vector<8x32xf32>
    %189 = arith.mulf %187, %188 : vector<8x32xf32>
    %190 = arith.addf %186, %189 : vector<8x32xf32>
    %191 = vector.extract_strided_slice %183 {offsets = [0, 96], sizes = [8, 32], strides = [1, 1]} : vector<8x128xf32> to vector<8x32xf32>
    %192 = math.tanh %190 : vector<8x32xf32>
    %193 = arith.mulf %191, %192 : vector<8x32xf32>
    %194 = vector.extract_strided_slice %19 {offsets = [72, 0], sizes = [8, 128], strides = [1, 1]} : vector<128x128xf32> to vector<8x128xf32>
    %195 = arith.truncf %193 : vector<8x32xf32> to vector<8x32xbf16>
    %cst_36 = arith.constant dense<0.000000e+00> : vector<8x128xf32>
    %196 = tpu.matmul %195, %20, %cst_36 {dimension_numbers = #tpu.dot_dimension_numbers<[1], [0], [0], [1], [0, 0, 1, 1], [], []>} : vector<8x32xbf16>, vector<32x128xbf16>, vector<8x128xf32> -> vector<8x128xf32>
    %197 = arith.addf %194, %196 : vector<8x128xf32>
    %198 = arith.negf %197 : vector<8x128xf32>
    %199 = math.exp %198 : vector<8x128xf32>
    %cst_37 = arith.constant 1.000000e+00 : f32
    %200 = vector.broadcast %cst_37 : f32 to vector<8x128xf32>
    %201 = arith.addf %200, %199 : vector<8x128xf32>
    %202 = arith.divf %200, %201 : vector<8x128xf32>
    %203 = math.tanh %197 : vector<8x128xf32>
    %204 = vector.extract_strided_slice %202 {offsets = [0, 32], sizes = [8, 32], strides = [1, 1]} : vector<8x128xf32> to vector<8x32xf32>
    %205 = arith.mulf %204, %190 : vector<8x32xf32>
    %206 = vector.extract_strided_slice %202 {offsets = [0, 0], sizes = [8, 32], strides = [1, 1]} : vector<8x128xf32> to vector<8x32xf32>
    %207 = vector.extract_strided_slice %203 {offsets = [0, 64], sizes = [8, 32], strides = [1, 1]} : vector<8x128xf32> to vector<8x32xf32>
    %208 = arith.mulf %206, %207 : vector<8x32xf32>
    %209 = arith.addf %205, %208 : vector<8x32xf32>
    %210 = vector.extract_strided_slice %202 {offsets = [0, 96], sizes = [8, 32], strides = [1, 1]} : vector<8x128xf32> to vector<8x32xf32>
    %211 = math.tanh %209 : vector<8x32xf32>
    %212 = arith.mulf %210, %211 : vector<8x32xf32>
    %213 = vector.extract_strided_slice %19 {offsets = [80, 0], sizes = [8, 128], strides = [1, 1]} : vector<128x128xf32> to vector<8x128xf32>
    %214 = arith.truncf %212 : vector<8x32xf32> to vector<8x32xbf16>
    %cst_38 = arith.constant dense<0.000000e+00> : vector<8x128xf32>
    %215 = tpu.matmul %214, %20, %cst_38 {dimension_numbers = #tpu.dot_dimension_numbers<[1], [0], [0], [1], [0, 0, 1, 1], [], []>} : vector<8x32xbf16>, vector<32x128xbf16>, vector<8x128xf32> -> vector<8x128xf32>
    %216 = arith.addf %213, %215 : vector<8x128xf32>
    %217 = arith.negf %216 : vector<8x128xf32>
    %218 = math.exp %217 : vector<8x128xf32>
    %cst_39 = arith.constant 1.000000e+00 : f32
    %219 = vector.broadcast %cst_39 : f32 to vector<8x128xf32>
    %220 = arith.addf %219, %218 : vector<8x128xf32>
    %221 = arith.divf %219, %220 : vector<8x128xf32>
    %222 = math.tanh %216 : vector<8x128xf32>
    %223 = vector.extract_strided_slice %221 {offsets = [0, 32], sizes = [8, 32], strides = [1, 1]} : vector<8x128xf32> to vector<8x32xf32>
    %224 = arith.mulf %223, %209 : vector<8x32xf32>
    %225 = vector.extract_strided_slice %221 {offsets = [0, 0], sizes = [8, 32], strides = [1, 1]} : vector<8x128xf32> to vector<8x32xf32>
    %226 = vector.extract_strided_slice %222 {offsets = [0, 64], sizes = [8, 32], strides = [1, 1]} : vector<8x128xf32> to vector<8x32xf32>
    %227 = arith.mulf %225, %226 : vector<8x32xf32>
    %228 = arith.addf %224, %227 : vector<8x32xf32>
    %229 = vector.extract_strided_slice %221 {offsets = [0, 96], sizes = [8, 32], strides = [1, 1]} : vector<8x128xf32> to vector<8x32xf32>
    %230 = math.tanh %228 : vector<8x32xf32>
    %231 = arith.mulf %229, %230 : vector<8x32xf32>
    %232 = vector.extract_strided_slice %19 {offsets = [88, 0], sizes = [8, 128], strides = [1, 1]} : vector<128x128xf32> to vector<8x128xf32>
    %233 = arith.truncf %231 : vector<8x32xf32> to vector<8x32xbf16>
    %cst_40 = arith.constant dense<0.000000e+00> : vector<8x128xf32>
    %234 = tpu.matmul %233, %20, %cst_40 {dimension_numbers = #tpu.dot_dimension_numbers<[1], [0], [0], [1], [0, 0, 1, 1], [], []>} : vector<8x32xbf16>, vector<32x128xbf16>, vector<8x128xf32> -> vector<8x128xf32>
    %235 = arith.addf %232, %234 : vector<8x128xf32>
    %236 = arith.negf %235 : vector<8x128xf32>
    %237 = math.exp %236 : vector<8x128xf32>
    %cst_41 = arith.constant 1.000000e+00 : f32
    %238 = vector.broadcast %cst_41 : f32 to vector<8x128xf32>
    %239 = arith.addf %238, %237 : vector<8x128xf32>
    %240 = arith.divf %238, %239 : vector<8x128xf32>
    %241 = math.tanh %235 : vector<8x128xf32>
    %242 = vector.extract_strided_slice %240 {offsets = [0, 32], sizes = [8, 32], strides = [1, 1]} : vector<8x128xf32> to vector<8x32xf32>
    %243 = arith.mulf %242, %228 : vector<8x32xf32>
    %244 = vector.extract_strided_slice %240 {offsets = [0, 0], sizes = [8, 32], strides = [1, 1]} : vector<8x128xf32> to vector<8x32xf32>
    %245 = vector.extract_strided_slice %241 {offsets = [0, 64], sizes = [8, 32], strides = [1, 1]} : vector<8x128xf32> to vector<8x32xf32>
    %246 = arith.mulf %244, %245 : vector<8x32xf32>
    %247 = arith.addf %243, %246 : vector<8x32xf32>
    %248 = vector.extract_strided_slice %240 {offsets = [0, 96], sizes = [8, 32], strides = [1, 1]} : vector<8x128xf32> to vector<8x32xf32>
    %249 = math.tanh %247 : vector<8x32xf32>
    %250 = arith.mulf %248, %249 : vector<8x32xf32>
    %251 = vector.extract_strided_slice %19 {offsets = [96, 0], sizes = [8, 128], strides = [1, 1]} : vector<128x128xf32> to vector<8x128xf32>
    %252 = arith.truncf %250 : vector<8x32xf32> to vector<8x32xbf16>
    %cst_42 = arith.constant dense<0.000000e+00> : vector<8x128xf32>
    %253 = tpu.matmul %252, %20, %cst_42 {dimension_numbers = #tpu.dot_dimension_numbers<[1], [0], [0], [1], [0, 0, 1, 1], [], []>} : vector<8x32xbf16>, vector<32x128xbf16>, vector<8x128xf32> -> vector<8x128xf32>
    %254 = arith.addf %251, %253 : vector<8x128xf32>
    %255 = arith.negf %254 : vector<8x128xf32>
    %256 = math.exp %255 : vector<8x128xf32>
    %cst_43 = arith.constant 1.000000e+00 : f32
    %257 = vector.broadcast %cst_43 : f32 to vector<8x128xf32>
    %258 = arith.addf %257, %256 : vector<8x128xf32>
    %259 = arith.divf %257, %258 : vector<8x128xf32>
    %260 = math.tanh %254 : vector<8x128xf32>
    %261 = vector.extract_strided_slice %259 {offsets = [0, 32], sizes = [8, 32], strides = [1, 1]} : vector<8x128xf32> to vector<8x32xf32>
    %262 = arith.mulf %261, %247 : vector<8x32xf32>
    %263 = vector.extract_strided_slice %259 {offsets = [0, 0], sizes = [8, 32], strides = [1, 1]} : vector<8x128xf32> to vector<8x32xf32>
    %264 = vector.extract_strided_slice %260 {offsets = [0, 64], sizes = [8, 32], strides = [1, 1]} : vector<8x128xf32> to vector<8x32xf32>
    %265 = arith.mulf %263, %264 : vector<8x32xf32>
    %266 = arith.addf %262, %265 : vector<8x32xf32>
    %267 = vector.extract_strided_slice %259 {offsets = [0, 96], sizes = [8, 32], strides = [1, 1]} : vector<8x128xf32> to vector<8x32xf32>
    %268 = math.tanh %266 : vector<8x32xf32>
    %269 = arith.mulf %267, %268 : vector<8x32xf32>
    %270 = vector.extract_strided_slice %19 {offsets = [104, 0], sizes = [8, 128], strides = [1, 1]} : vector<128x128xf32> to vector<8x128xf32>
    %271 = arith.truncf %269 : vector<8x32xf32> to vector<8x32xbf16>
    %cst_44 = arith.constant dense<0.000000e+00> : vector<8x128xf32>
    %272 = tpu.matmul %271, %20, %cst_44 {dimension_numbers = #tpu.dot_dimension_numbers<[1], [0], [0], [1], [0, 0, 1, 1], [], []>} : vector<8x32xbf16>, vector<32x128xbf16>, vector<8x128xf32> -> vector<8x128xf32>
    %273 = arith.addf %270, %272 : vector<8x128xf32>
    %274 = arith.negf %273 : vector<8x128xf32>
    %275 = math.exp %274 : vector<8x128xf32>
    %cst_45 = arith.constant 1.000000e+00 : f32
    %276 = vector.broadcast %cst_45 : f32 to vector<8x128xf32>
    %277 = arith.addf %276, %275 : vector<8x128xf32>
    %278 = arith.divf %276, %277 : vector<8x128xf32>
    %279 = math.tanh %273 : vector<8x128xf32>
    %280 = vector.extract_strided_slice %278 {offsets = [0, 32], sizes = [8, 32], strides = [1, 1]} : vector<8x128xf32> to vector<8x32xf32>
    %281 = arith.mulf %280, %266 : vector<8x32xf32>
    %282 = vector.extract_strided_slice %278 {offsets = [0, 0], sizes = [8, 32], strides = [1, 1]} : vector<8x128xf32> to vector<8x32xf32>
    %283 = vector.extract_strided_slice %279 {offsets = [0, 64], sizes = [8, 32], strides = [1, 1]} : vector<8x128xf32> to vector<8x32xf32>
    %284 = arith.mulf %282, %283 : vector<8x32xf32>
    %285 = arith.addf %281, %284 : vector<8x32xf32>
    %286 = vector.extract_strided_slice %278 {offsets = [0, 96], sizes = [8, 32], strides = [1, 1]} : vector<8x128xf32> to vector<8x32xf32>
    %287 = math.tanh %285 : vector<8x32xf32>
    %288 = arith.mulf %286, %287 : vector<8x32xf32>
    %289 = vector.extract_strided_slice %19 {offsets = [112, 0], sizes = [8, 128], strides = [1, 1]} : vector<128x128xf32> to vector<8x128xf32>
    %290 = arith.truncf %288 : vector<8x32xf32> to vector<8x32xbf16>
    %cst_46 = arith.constant dense<0.000000e+00> : vector<8x128xf32>
    %291 = tpu.matmul %290, %20, %cst_46 {dimension_numbers = #tpu.dot_dimension_numbers<[1], [0], [0], [1], [0, 0, 1, 1], [], []>} : vector<8x32xbf16>, vector<32x128xbf16>, vector<8x128xf32> -> vector<8x128xf32>
    %292 = arith.addf %289, %291 : vector<8x128xf32>
    %293 = arith.negf %292 : vector<8x128xf32>
    %294 = math.exp %293 : vector<8x128xf32>
    %cst_47 = arith.constant 1.000000e+00 : f32
    %295 = vector.broadcast %cst_47 : f32 to vector<8x128xf32>
    %296 = arith.addf %295, %294 : vector<8x128xf32>
    %297 = arith.divf %295, %296 : vector<8x128xf32>
    %298 = math.tanh %292 : vector<8x128xf32>
    %299 = vector.extract_strided_slice %297 {offsets = [0, 32], sizes = [8, 32], strides = [1, 1]} : vector<8x128xf32> to vector<8x32xf32>
    %300 = arith.mulf %299, %285 : vector<8x32xf32>
    %301 = vector.extract_strided_slice %297 {offsets = [0, 0], sizes = [8, 32], strides = [1, 1]} : vector<8x128xf32> to vector<8x32xf32>
    %302 = vector.extract_strided_slice %298 {offsets = [0, 64], sizes = [8, 32], strides = [1, 1]} : vector<8x128xf32> to vector<8x32xf32>
    %303 = arith.mulf %301, %302 : vector<8x32xf32>
    %304 = arith.addf %300, %303 : vector<8x32xf32>
    %305 = vector.extract_strided_slice %297 {offsets = [0, 96], sizes = [8, 32], strides = [1, 1]} : vector<8x128xf32> to vector<8x32xf32>
    %306 = math.tanh %304 : vector<8x32xf32>
    %307 = arith.mulf %305, %306 : vector<8x32xf32>
    %308 = vector.extract_strided_slice %19 {offsets = [120, 0], sizes = [8, 128], strides = [1, 1]} : vector<128x128xf32> to vector<8x128xf32>
    %309 = arith.truncf %307 : vector<8x32xf32> to vector<8x32xbf16>
    %cst_48 = arith.constant dense<0.000000e+00> : vector<8x128xf32>
    %310 = tpu.matmul %309, %20, %cst_48 {dimension_numbers = #tpu.dot_dimension_numbers<[1], [0], [0], [1], [0, 0, 1, 1], [], []>} : vector<8x32xbf16>, vector<32x128xbf16>, vector<8x128xf32> -> vector<8x128xf32>
    %311 = arith.addf %308, %310 : vector<8x128xf32>
    %312 = arith.negf %311 : vector<8x128xf32>
    %313 = math.exp %312 : vector<8x128xf32>
    %cst_49 = arith.constant 1.000000e+00 : f32
    %314 = vector.broadcast %cst_49 : f32 to vector<8x128xf32>
    %315 = arith.addf %314, %313 : vector<8x128xf32>
    %316 = arith.divf %314, %315 : vector<8x128xf32>
    %317 = math.tanh %311 : vector<8x128xf32>
    %318 = vector.extract_strided_slice %316 {offsets = [0, 32], sizes = [8, 32], strides = [1, 1]} : vector<8x128xf32> to vector<8x32xf32>
    %319 = arith.mulf %318, %304 : vector<8x32xf32>
    %320 = vector.extract_strided_slice %316 {offsets = [0, 0], sizes = [8, 32], strides = [1, 1]} : vector<8x128xf32> to vector<8x32xf32>
    %321 = vector.extract_strided_slice %317 {offsets = [0, 64], sizes = [8, 32], strides = [1, 1]} : vector<8x128xf32> to vector<8x32xf32>
    %322 = arith.mulf %320, %321 : vector<8x32xf32>
    %323 = arith.addf %319, %322 : vector<8x32xf32>
    %324 = vector.extract_strided_slice %316 {offsets = [0, 96], sizes = [8, 32], strides = [1, 1]} : vector<8x128xf32> to vector<8x32xf32>
    %325 = math.tanh %323 : vector<8x32xf32>
    %326 = arith.mulf %324, %325 : vector<8x32xf32>
    %c0_50 = arith.constant 0 : index
    %c0_51 = arith.constant 0 : index
    %327 = vector.load %arg0[%c0_50, %c0_51] : memref<48x16xf32, #tpu.memory_space<vmem>>, vector<48x16xf32>
    %cst_52 = arith.constant dense<0.000000e+00> : vector<48x32xf32>
    %328 = tpu.matmul %327, %2, %cst_52 {dimension_numbers = #tpu.dot_dimension_numbers<[1], [0], [0], [1], [0, 0, 1, 1], [], []>} : vector<48x16xf32>, vector<16x32xf32>, vector<48x32xf32> -> vector<48x32xf32>
    %cst_53 = arith.constant dense<0.000000e+00> : vector<48x32xf32>
    %329 = tpu.matmul %7, %328, %cst_53 {dimension_numbers = #tpu.dot_dimension_numbers<[1], [0], [0], [1], [0, 0, 1, 1], [], []>} : vector<48x48xf32>, vector<48x32xf32>, vector<48x32xf32> -> vector<48x32xf32>
    %330 = vector.broadcast %10 : vector<1x32xf32> to vector<48x32xf32>
    %331 = arith.addf %329, %330 : vector<48x32xf32>
    %cst_54 = arith.constant 0.000000e+00 : f32
    %332 = vector.broadcast %cst_54 : f32 to vector<48x32xf32>
    %333 = arith.maximumf %331, %332 : vector<48x32xf32>
    %cst_55 = arith.constant dense<0.000000e+00> : vector<48x32xf32>
    %334 = tpu.matmul %333, %3, %cst_55 {dimension_numbers = #tpu.dot_dimension_numbers<[1], [0], [0], [1], [0, 0, 1, 1], [], []>} : vector<48x32xf32>, vector<32x32xf32>, vector<48x32xf32> -> vector<48x32xf32>
    %cst_56 = arith.constant dense<0.000000e+00> : vector<48x32xf32>
    %335 = tpu.matmul %7, %334, %cst_56 {dimension_numbers = #tpu.dot_dimension_numbers<[1], [0], [0], [1], [0, 0, 1, 1], [], []>} : vector<48x48xf32>, vector<48x32xf32>, vector<48x32xf32> -> vector<48x32xf32>
    %336 = vector.broadcast %11 : vector<1x32xf32> to vector<48x32xf32>
    %337 = arith.addf %335, %336 : vector<48x32xf32>
    %cst_57 = arith.constant 0.000000e+00 : f32
    %338 = vector.broadcast %cst_57 : f32 to vector<48x32xf32>
    %339 = arith.maximumf %337, %338 : vector<48x32xf32>
    %cst_58 = arith.constant dense<0.000000e+00> : vector<48x32xf32>
    %340 = tpu.matmul %339, %3, %cst_58 {dimension_numbers = #tpu.dot_dimension_numbers<[1], [0], [0], [1], [0, 0, 1, 1], [], []>} : vector<48x32xf32>, vector<32x32xf32>, vector<48x32xf32> -> vector<48x32xf32>
    %cst_59 = arith.constant dense<0.000000e+00> : vector<8x32xf32>
    %341 = tpu.matmul %8, %340, %cst_59 {dimension_numbers = #tpu.dot_dimension_numbers<[1], [0], [0], [1], [0, 0, 1, 1], [], []>} : vector<8x48xf32>, vector<48x32xf32>, vector<8x32xf32> -> vector<8x32xf32>
    %342 = vector.broadcast %11 : vector<1x32xf32> to vector<8x32xf32>
    %343 = arith.addf %341, %342 : vector<8x32xf32>
    %cst_60 = arith.constant dense<0.000000e+00> : vector<8x32xf32>
    %344 = tpu.matmul %326, %4, %cst_60 {dimension_numbers = #tpu.dot_dimension_numbers<[1], [0], [0], [1], [0, 0, 1, 1], [], []>} : vector<8x32xf32>, vector<32x32xf32>, vector<8x32xf32> -> vector<8x32xf32>
    %cst_61 = arith.constant dense<0.000000e+00> : vector<8x32xf32>
    %345 = tpu.matmul %343, %5, %cst_61 {dimension_numbers = #tpu.dot_dimension_numbers<[1], [0], [0], [1], [0, 0, 1, 1], [], []>} : vector<8x32xf32>, vector<32x32xf32>, vector<8x32xf32> -> vector<8x32xf32>
    %346 = arith.addf %344, %345 : vector<8x32xf32>
    %347 = vector.broadcast %12 : vector<1x32xf32> to vector<8x32xf32>
    %348 = arith.addf %346, %347 : vector<8x32xf32>
    %cst_62 = arith.constant 0.000000e+00 : f32
    %349 = vector.broadcast %cst_62 : f32 to vector<8x32xf32>
    %350 = arith.maximumf %348, %349 : vector<8x32xf32>
    %cst_63 = arith.constant dense<0.000000e+00> : vector<8x4xf32>
    %351 = tpu.matmul %350, %6, %cst_63 {dimension_numbers = #tpu.dot_dimension_numbers<[1], [0], [0], [1], [0, 0, 1, 1], [], []>} : vector<8x32xf32>, vector<32x4xf32>, vector<8x4xf32> -> vector<8x4xf32>
    %352 = vector.broadcast %13 : vector<1x4xf32> to vector<8x4xf32>
    %353 = arith.addf %351, %352 : vector<8x4xf32>
    %cst_64 = arith.constant dense<0xFF800000> : vector<8xf32>
    %354 = vector.multi_reduction <maximumf>, %353, %cst_64 [1] : vector<8x4xf32> to vector<8xf32>
    %355 = vector.shape_cast %354 : vector<8xf32> to vector<8x1xf32>
    %356 = vector.broadcast %355 : vector<8x1xf32> to vector<8x4xf32>
    %357 = arith.subf %353, %356 : vector<8x4xf32>
    %358 = math.exp %357 : vector<8x4xf32>
    %cst_65 = arith.constant dense<0.000000e+00> : vector<8xf32>
    %359 = vector.multi_reduction <add>, %358, %cst_65 [1] : vector<8x4xf32> to vector<8xf32>
    %360 = vector.shape_cast %359 : vector<8xf32> to vector<8x1xf32>
    %361 = math.log %360 : vector<8x1xf32>
    %362 = arith.addf %361, %355 : vector<8x1xf32>
    %363 = vector.broadcast %362 : vector<8x1xf32> to vector<8x4xf32>
    %364 = arith.subf %353, %363 : vector<8x4xf32>
    %c0_66 = arith.constant 0 : index
    %c0_67 = arith.constant 0 : index
    %365 = vector.load %arg3[%c0_66, %c0_67] : memref<8x4xf32, #tpu.memory_space<vmem>>, vector<8x4xf32>
    tpu.vector_store %arg3[%c0_66, %c0_67], %364 {strides = array<i32>} : memref<8x4xf32, #tpu.memory_space<vmem>>, vector<8x4xf32>,
    return
  }
}

</mosaic_0001>

<bundles_post_ra>
// kernel: forward.1
= control target key start
LH: loop header
LB: loop body
LE: loop exit
PB: predicated region body
PF: predicated region fallthrough
CT: control target
= control target key end

     0   :  { %v2885_v0 = vmov 0.0   ;;  %vm104_vm0 = vcmask 1043456   ;;  %vm2886_vm1 = vmmov 0   ;;  %vm79_vm2 = vcmask 64512   ;;  %s2888_s5 = smov 64   ;;  %s2889_s6 = smov 32   ;;  %s3432_s2 = inlined_call_operand.vmem [shape: f32[248,128], index: 2, kind: input, shape index: {}]   ;;  %s3433_s1 = inlined_call_operand.vmem [shape: f32[128,8], index: 1, kind: input, shape index: {}]   ;;  %s3434_s0 = inlined_call_operand.vmem [shape: f32[48,16], index: 0, kind: input, shape index: {}]   ;;  %s3435_s3 = inlined_call_operand.vmem [shape: f32[8,4], index: 3, kind: output, shape index: {}]  }
   0x1   :  { %2481 = vmatprep.subr.bf16.mxu1 %v2885_v0  ;;  %v15_v1 = vld [vmem:[%s3432_s2] sm:$0xff]  ;;  %v18_v2 = vld [vmem:[%s3432_s2 + $0x18] sm:$0xff]  ;;  %2485 = vmatprep.mubr.msk.bf16.mxu1 %vm2886_vm1, %v2885_v0  ;;  %v51_v7 = vld [vmem:[%s3433_s1 + $0x8] sm:$0xff]  ;;  %v2887_v16 = vmov 0   ;;  %vm207_vm3 = vcmask 261120   ;;  %vm1362_vm4 = vcmask 130048  }
   0x2   :  { %v19_v3 = vld [vmem:[%s3432_s2 + $0x20] sm:$0xff]  ;;  %v74_v4 = vpack.c.bf16 %v15_v1, %v15_v1  ;;  %v52_v8 = vld [vmem:[%s3433_s1 + $0x10] sm:$0xff]  ;;  %v53_v10 = vld [vmem:[%s3433_s1 + $0x18] sm:$0xff]  ;;  %vm1480_vm5 = vcmask 392192   ;;  %vm2235_vm6 = vcmask 31744  }
   0x3   :  { %v2922_v5 = vpack.c.bf16 %v19_v3, %v18_v2  ;;  %v50_v6 = vld [vmem:[%s3433_s1] sm:$0xff]  ;;  %v16_v11 = vld [vmem:[%s3432_s2 + $0x8] sm:$0xff]  ;;  %v17_v12 = vld [vmem:[%s3432_s2 + $0x10] sm:$0xff]  ;;  %v67_v14 = vpack.c.bf16 %v53_v10, %v52_v8 }
   0x4   :  { %v66_v9 = vpack.c.bf16 %v51_v7, %v50_v6  ;;  %2746 = vmatprep.subr.msk.bf16.mxu0 %vm104_vm0, %v74_v4  ;;  %v106_v13 = vsel %vm104_vm0, %v74_v4, 0  ;;  %v2945_v15 = vpack.c.bf16 %v17_v12, %v16_v11  ;;  %v2968_v18 = vld [vmem:[%s3432_s2 + $0xf0] ss:$0 sm:$0xff] }
   0x5   :  { %2482 = vmatpush3.bf16.msra.mxu1 %v2922_v5  ;;  %2464 = vmatpush3.bf16.msra.mxu0 %v106_v13 }
   0x6   :  { %2465 = vmatprep.mubr.msk.bf16.mxu0 %vm79_vm2, %v66_v9  ;;  %2483 = vmatprep.subr.bf16.mxu1 %v2885_v0 }
   0x7   :  { %2513 = vmatprep.subr.bf16.mxu0 %v2885_v0 }
   0x8   :  { %2466 = vmatmul.mubr.msk.bf16.vlgmr.msra.gmra.mxu0 %vm79_vm2, %v67_v14 }
   0x9   :  { %2484 = vmatpush3.bf16.msra.mxu1 %v2945_v15  ;;  %2514 = vmatpush3.bf16.msra.mxu0 %v2922_v5 }
   0xa   :  { %2489 = vmatprep.subr.bf16.mxu1 %v2885_v0  ;;  %2515 = vmatprep.subr.bf16.mxu0 %v2885_v0 }
   0xc   :  { %2486 = vmatmul.mubr.bf16.vlgmr.msra.gmra.mxu1 %v2887_v16 }
   0xd   :  { %2490 = vmatpush3.bf16.msra.mxu1 %v2922_v5  ;;  %2493 = vmatprep.mubr.msk.bf16.mxu1 %vm2886_vm1, %v2885_v0 }
   0xe   :  { %2491 = vmatprep.subr.bf16.mxu1 %v2885_v0  ;;  %2516 = vmatpush3.bf16.msra.mxu0 %v2945_v15 }
   0xf   :  { %2529 = vmatprep.subr.bf16.mxu0 %v2885_v0 }
  0x11   :  { %2492 = vmatpush3.bf16.msra.mxu1 %v2945_v15 }
  0x12   :  { %2497 = vmatprep.subr.bf16.mxu1 %v2885_v0 }
  0xc8   :  { %v2963_v17 = vpop.f32.mrf.mxu0 }
  0xc9   :  { %v151_v1 = vadd.f32 %v2963_v17, %v2968_v18 }
  0xca   :  { %v142_v19 = vpop.f32.mrf.mxu0 }
  0xcb   :  { %v143_v20 = vadd.f32 %v2968_v18, %v142_v19 }
  0xcc   :  { %v245_v21 = vpop.f32.mrf.mxu1  ;;  %v2982_v41 = vpop.f32.mrf.mxu0 }
  0xcd   :  { %v251_v22 = vadd.f32 %v245_v21, %v143_v20 }
  0xce   :  { %v2487_v23 = vpop.f32.mrf.mxu1  ;;  %v145_v42 = vpop.f32.mrf.mxu0 }
  0xcf   :  { %2752 = vtanh.f32 %v251_v22  ;;  %v2263_v27 = vmul.f32 -1.442695, %v251_v22  ;;  %v146_v43 = vadd.f32 %v2968_v18, %v145_v42  ;;  %v55_v42 = vld [vmem:[%s3433_s1 + $0x28] sm:$0xff] }
  0xd0   :  { %v248_v24 = vpop.f32.mrf.mxu1 }
  0xd1   :  { %2754 = vpow2.f32 %v2263_v27 }
  0xd2   :  { %v2488_v25 = vpop.f32.mrf.mxu1 }
  0xd3   :  { %v154_v25 = vadd.f32 %v2982_v41, %v2968_v18  ;;  %v54_v41 = vld [vmem:[%s3433_s1 + $0x20] sm:$0xff] }
  0xdc   :  { %v2753_v26 = vpop.eup %2752 }
  0xdd   :  { %261 = vrot.lane.b32.xlu0 %v2753_v26, %s2888_s5 }
  0xde   :  { %v2755_v28 = vpop.eup %2754 }
  0xdf   :  { %v255_v29 = vadd.f32 1.0, %v2755_v28 }
  0xe1   :  { %2756 = vrcp.f32 %v255_v29 }
  0xee   :  { %v2757_v30 = vpop.eup %2756 }
  0xef   :  { %v259_v33 = vmul.f32 0.0, %v2757_v30 }
 0x14f   :  { %v262_v31 = vpop.permute.xlu0 %261 }
 0x150   :  { %v264_v32 = vmul.f32 %v2757_v30, %v262_v31 }
 0x152   :  { %266 = vrot.lane.b32.xlu0 %v264_v32, %s2889_s6 }
 0x1c4   :  { %v267_v34 = vpop.permute.xlu0 %266 }
 0x1c5   :  { %v269_v35 = vadd.f32 %v267_v34, %v259_v33 }
 0x1c7   :  { %2758 = vtanh.f32 %v269_v35 }
 0x1d4   :  { %v2759_v36 = vpop.eup %2758 }
 0x1d5   :  { %272 = vrot.lane.b32.xlu1 %v2759_v36, %s2888_s5 }
 0x247   :  { %v273_v37 = vpop.permute.xlu1 %272 }
 0x248   :  { %v275_v38 = vmul.f32 %v2757_v30, %v273_v37 }
 0x24a   :  { %v276_v39 = vpack.c.bf16 %v275_v38, %v275_v38 }
 0x24c   :  { %278 = vrot.lane.b32.xlu1 %v276_v39, %s2889_s6 }
 0x2be   :  { %v279_v40 = vpop.permute.xlu1 %278 }
 0x2bf   :  { %2494 = vmatmul.mubr.msk.bf16.vlgmr.msra.gmra.mxu1 %vm207_vm3, %v279_v40 }
 0x2c0   :  { %2498 = vmatpush3.bf16.msra.mxu1 %v2922_v5  ;;  %2501 = vmatprep.mubr.msk.bf16.mxu1 %vm2886_vm1, %v2885_v0 }
 0x2c1   :  { %2499 = vmatprep.subr.bf16.mxu1 %v2885_v0 }
 0x2c4   :  { %2500 = vmatpush3.bf16.msra.mxu1 %v2945_v15 }
 0x2c5   :  { %2505 = vmatprep.subr.bf16.mxu1 %v2885_v0 }
 0x37f   :  { %v317_v44 = vpop.f32.mrf.mxu1 }
 0x380   :  { %v323_v45 = vadd.f32 %v317_v44, %v146_v43  ;;  %v56_v43 = vld [vmem:[%s3433_s1 + $0x30] sm:$0xff]  ;;  %v68_v44 = vpack.c.bf16 %v55_v42, %v54_v41 }
 0x381   :  { %v2495_v46 = vpop.f32.mrf.mxu1 }
 0x382   :  { %2760 = vtanh.f32 %v323_v45  ;;  %v2265_v50 = vmul.f32 -1.442695, %v323_v45  ;;  %v57_v45 = vld [vmem:[%s3433_s1 + $0x38] sm:$0xff]  ;;  %v58_v46 = vld [vmem:[%s3433_s1 + $0x40] sm:$0xff]  ;;  %2469 = vmatprep.mubr.msk.bf16.mxu0 %vm79_vm2, %v68_v44 }
 0x383   :  { %v320_v47 = vpop.f32.mrf.mxu1 }
 0x384   :  { %2762 = vpow2.f32 %v2265_v50  ;;  %v59_v47 = vld [vmem:[%s3433_s1 + $0x48] sm:$0xff]  ;;  %v60_v50 = vld [vmem:[%s3433_s1 + $0x50] sm:$0xff] }
 0x385   :  { %v2496_v48 = vpop.f32.mrf.mxu1 }
 0x386   :  { %v69_v48 = vpack.c.bf16 %v57_v45, %v56_v43 }
 0x388   :  { %2470 = vmatmul.mubr.msk.bf16.gmra.mxu0 %vm79_vm2, %v69_v48 }
 0x38f   :  { %v2761_v49 = vpop.eup %2760 }
 0x390   :  { %333 = vrot.lane.b32.xlu0 %v2761_v49, %s2888_s5  ;;  %v70_v49 = vpack.c.bf16 %v59_v47, %v58_v46 }
 0x391   :  { %v2763_v51 = vpop.eup %2762 }
 0x392   :  { %v327_v52 = vadd.f32 1.0, %v2763_v51  ;;  %2473 = vmatprep.mubr.msk.bf16.mxu0 %vm79_vm2, %v70_v49  ;;  %v61_v51 = vld [vmem:[%s3433_s1 + $0x58] sm:$0xff] }
 0x394   :  { %2764 = vrcp.f32 %v327_v52  ;;  %v62_v52 = vld [vmem:[%s3433_s1 + $0x60] sm:$0xff] }
 0x3a1   :  { %v2765_v53 = vpop.eup %2764 }
 0x3a2   :  { %v331_v56 = vmul.f32 %v2765_v53, %v269_v35 }
 0x402   :  { %v334_v54 = vpop.permute.xlu0 %333 }
 0x403   :  { %v336_v55 = vmul.f32 %v2765_v53, %v334_v54 }
 0x405   :  { %338 = vrot.lane.b32.xlu1 %v336_v55, %s2889_s6  ;;  %v71_v55 = vpack.c.bf16 %v61_v51, %v60_v50 }
 0x407   :  { %2474 = vmatmul.mubr.msk.bf16.gmra.mxu0 %vm79_vm2, %v71_v55 }
 0x477   :  { %v339_v57 = vpop.permute.xlu1 %338 }
 0x478   :  { %v341_v58 = vadd.f32 %v339_v57, %v331_v56  ;;  %v64_v57 = vld [vmem:[%s3433_s1 + $0x70] sm:$0xff] }
 0x47a   :  { %2766 = vtanh.f32 %v341_v58 }
 0x487   :  { %v2767_v59 = vpop.eup %2766 }
 0x488   :  { %344 = vrot.lane.b32.xlu0 %v2767_v59, %s2888_s5 }
 0x4fa   :  { %v345_v60 = vpop.permute.xlu0 %344 }
 0x4fb   :  { %v347_v61 = vmul.f32 %v2765_v53, %v345_v60  ;;  %v63_v53 = vld [vmem:[%s3433_s1 + $0x68] sm:$0xff] }
 0x4fc   :  { %v72_v56 = vpack.c.bf16 %v63_v53, %v62_v52 }
 0x4fd   :  { %v348_v62 = vpack.c.bf16 %v347_v61, %v347_v61 }
 0x4fe   :  { %2477 = vmatprep.mubr.msk.bf16.mxu0 %vm79_vm2, %v72_v56 }
 0x4ff   :  { %350 = vrot.lane.b32.xlu1 %v348_v62, %s2889_s6 }
 0x571   :  { %v351_v63 = vpop.permute.xlu1 %350 }
 0x572   :  { %2502 = vmatmul.mubr.msk.bf16.vlgmr.msra.gmra.mxu1 %vm207_vm3, %v351_v63 }
 0x573   :  { %2506 = vmatpush3.bf16.msra.mxu1 %v2922_v5  ;;  %2509 = vmatprep.mubr.msk.bf16.mxu1 %vm2886_vm1, %v2885_v0 }
 0x574   :  { %2507 = vmatprep.subr.bf16.mxu1 %v2885_v0 }
 0x577   :  { %2508 = vmatpush3.bf16.msra.mxu1 %v2945_v15 }
 0x578   :  { %2521 = vmatprep.subr.bf16.mxu1 %v2885_v0 }
 0x632   :  { %v389_v2 = vpop.f32.mrf.mxu1 }
 0x633   :  { %v395_v3 = vadd.f32 %v389_v2, %v151_v1  ;;  %v3069_v1 = vpop.f32.mrf.mxu0 }
 0x634   :  { %v2503_v4 = vpop.f32.mrf.mxu1 }
 0x635   :  { %2768 = vtanh.f32 %v395_v3  ;;  %v2267_v9 = vmul.f32 -1.442695, %v395_v3  ;;  %v158_v2 = vpop.f32.mrf.mxu0 }
 0x636   :  { %v392_v6 = vpop.f32.mrf.mxu1 }
 0x637   :  { %2770 = vpow2.f32 %v2267_v9  ;;  %v3071_v3 = vpop.f32.mrf.mxu0 }
 0x638   :  { %v2504_v7 = vpop.f32.mrf.mxu1 }
 0x639   :  { %v161_v4 = vpop.f32.mrf.mxu0 }
 0x63b   :  { %v3073_v6 = vpop.f32.mrf.mxu0 }
 0x63d   :  { %v3075_v7 = vpop.f32.mrf.mxu0 }
 0x642   :  { %v2769_v8 = vpop.eup %2768 }
 0x643   :  { %405 = vrot.lane.b32.xlu0 %v2769_v8, %s2888_s5  ;;  %v3077_v8 = vpop.f32.mrf.mxu0 }
 0x644   :  { %v2771_v10 = vpop.eup %2770 }
 0x645   :  { %v399_v11 = vadd.f32 1.0, %v2771_v10  ;;  %v3079_v9 = vpop.f32.mrf.mxu0 }
 0x647   :  { %2772 = vrcp.f32 %v399_v11 }
 0x654   :  { %v2773_v12 = vpop.eup %2772 }
 0x655   :  { %v403_v16 = vmul.f32 %v2773_v12, %v341_v58  ;;  %v65_v58 = vld [vmem:[%s3433_s1 + $0x78] sm:$0xff] }
 0x656   :  { %v73_v59 = vpack.c.bf16 %v65_v58, %v64_v57  ;;  %v167_v58 = vadd.f32 %v3069_v1, %v2968_v18 }
 0x658   :  { %2478 = vmatmul.mubr.msk.bf16.gmra.mxu0 %vm79_vm2, %v73_v59 }
 0x659   :  { %2517 = vmatprep.mubr.msk.bf16.mxu0 %vm2886_vm1, %v2885_v0 }
 0x6b5   :  { %v406_v13 = vpop.permute.xlu0 %405 }
 0x6b6   :  { %v408_v14 = vmul.f32 %v2773_v12, %v406_v13 }
 0x6b8   :  { %410 = vrot.lane.b32.xlu1 %v408_v14, %s2889_s6  ;;  %v159_v14 = vadd.f32 %v2968_v18, %v158_v2 }
 0x718   :  { %v3081_v10 = vpop.f32.mrf.mxu0 }
 0x71a   :  { %v3083_v11 = vpop.f32.mrf.mxu0 }
 0x72a   :  { %v411_v17 = vpop.permute.xlu1 %410 }
 0x72b   :  { %v413_v19 = vadd.f32 %v411_v17, %v403_v16 }
 0x72d   :  { %2774 = vtanh.f32 %v413_v19 }
 0x73a   :  { %v2775_v20 = vpop.eup %2774 }
 0x73b   :  { %416 = vrot.lane.b32.xlu0 %v2775_v20, %s2888_s5 }
 0x7ad   :  { %v417_v21 = vpop.permute.xlu0 %416 }
 0x7ae   :  { %v419_v22 = vmul.f32 %v2773_v12, %v417_v21  ;;  %v3085_v12 = vpop.f32.mrf.mxu0 }
 0x7b0   :  { %v420_v23 = vpack.c.bf16 %v419_v22, %v419_v22  ;;  %v3087_v13 = vpop.f32.mrf.mxu0 }
 0x7b2   :  { %422 = vrot.lane.b32.xlu1 %v420_v23, %s2889_s6 }
 0x824   :  { %v423_v24 = vpop.permute.xlu1 %422 }
 0x825   :  { %2510 = vmatmul.mubr.msk.bf16.vlgmr.msra.gmra.mxu1 %vm207_vm3, %v423_v24 }
 0x826   :  { %2522 = vmatpush3.bf16.msra.mxu1 %v2922_v5  ;;  %2525 = vmatprep.mubr.msk.bf16.mxu1 %vm2886_vm1, %v2885_v0 }
 0x827   :  { %2523 = vmatprep.subr.bf16.mxu1 %v2885_v0 }
 0x82a   :  { %2524 = vmatpush3.bf16.msra.mxu1 %v2945_v15 }
 0x82b   :  { %2537 = vmatprep.subr.bf16.mxu1 %v2885_v0 }
 0x8e5   :  { %v461_v26 = vpop.f32.mrf.mxu1 }
 0x8e6   :  { %v467_v27 = vadd.f32 %v461_v26, %v154_v25 }
 0x8e7   :  { %v2511_v28 = vpop.f32.mrf.mxu1 }
 0x8e8   :  { %2776 = vtanh.f32 %v467_v27  ;;  %v2269_v32 = vmul.f32 -1.442695, %v467_v27 }
 0x8e9   :  { %v464_v29 = vpop.f32.mrf.mxu1 }
 0x8ea   :  { %2778 = vpow2.f32 %v2269_v32 }
 0x8eb   :  { %v2512_v30 = vpop.f32.mrf.mxu1 }
 0x8f5   :  { %v2777_v31 = vpop.eup %2776 }
 0x8f6   :  { %477 = vrot.lane.b32.xlu0 %v2777_v31, %s2888_s5 }
 0x8f7   :  { %v2779_v33 = vpop.eup %2778 }
 0x8f8   :  { %v471_v34 = vadd.f32 1.0, %v2779_v33 }
 0x8fa   :  { %2780 = vrcp.f32 %v471_v34 }
 0x907   :  { %v2781_v35 = vpop.eup %2780 }
 0x908   :  { %v475_v38 = vmul.f32 %v2781_v35, %v413_v19 }
 0x968   :  { %v478_v36 = vpop.permute.xlu0 %477 }
 0x969   :  { %v480_v37 = vmul.f32 %v2781_v35, %v478_v36 }
 0x96b   :  { %482 = vrot.lane.b32.xlu1 %v480_v37, %s2889_s6  ;;  %v162_v37 = vadd.f32 %v2968_v18, %v161_v4 }
 0x9dd   :  { %v483_v39 = vpop.permute.xlu1 %482 }
 0x9de   :  { %v3013_v40 = vadd.f32 %v483_v39, %v475_v38 }
 0x9e0   :  { %2782 = vtanh.f32 %v3013_v40 }
 0x9ed   :  { %v2783_v54 = vpop.eup %2782 }
 0x9ee   :  { %488 = vrot.lane.b32.xlu0 %v2783_v54, %s2888_s5 }
 0xa60   :  { %v489_v60 = vpop.permute.xlu0 %488 }
 0xa61   :  { %v491_v61 = vmul.f32 %v2781_v35, %v489_v60 }
 0xa63   :  { %v492_v62 = vpack.c.bf16 %v491_v61, %v491_v61 }
 0xa65   :  { %494 = vrot.lane.b32.xlu1 %v492_v62, %s2889_s6 }
 0xad7   :  { %v495_v63 = vpop.permute.xlu1 %494 }
 0xad8   :  { %2518 = vmatmul.mubr.msk.bf16.vlgmr.msra.gmra.mxu0 %vm207_vm3, %v495_v63 }
 0xad9   :  { %2530 = vmatpush3.bf16.msra.mxu0 %v2922_v5  ;;  %2533 = vmatprep.mubr.msk.bf16.mxu0 %vm2886_vm1, %v2885_v0 }
 0xada   :  { %2531 = vmatprep.subr.bf16.mxu0 %v2885_v0 }
 0xadd   :  { %2532 = vmatpush3.bf16.msra.mxu0 %v2945_v15 }
 0xade   :  { %2545 = vmatprep.subr.bf16.mxu0 %v2885_v0 }
 0xb98   :  { %v533_v16 = vpop.f32.mrf.mxu0 }
 0xb99   :  { %v539_v17 = vadd.f32 %v533_v16, %v159_v14 }
 0xb9a   :  { %v2519_v19 = vpop.f32.mrf.mxu0 }
 0xb9b   :  { %2784 = vtanh.f32 %v539_v17  ;;  %v2271_v23 = vmul.f32 -1.442695, %v539_v17 }
 0xb9c   :  { %v536_v20 = vpop.f32.mrf.mxu0 }
 0xb9d   :  { %2786 = vpow2.f32 %v2271_v23 }
 0xb9e   :  { %v2520_v21 = vpop.f32.mrf.mxu0 }
 0xba8   :  { %v2785_v22 = vpop.eup %2784 }
 0xba9   :  { %549 = vrot.lane.b32.xlu0 %v2785_v22, %s2888_s5 }
 0xbaa   :  { %v2787_v24 = vpop.eup %2786 }
 0xbab   :  { %v543_v25 = vadd.f32 1.0, %v2787_v24 }
 0xbad   :  { %2788 = vrcp.f32 %v543_v25 }
 0xbba   :  { %v2789_v26 = vpop.eup %2788 }
 0xbbb   :  { %v547_v29 = vmul.f32 %v2789_v26, %v3013_v40 }
 0xc1b   :  { %v550_v27 = vpop.permute.xlu0 %549 }
 0xc1c   :  { %v552_v28 = vmul.f32 %v2789_v26, %v550_v27 }
 0xc1e   :  { %554 = vrot.lane.b32.xlu1 %v552_v28, %s2889_s6  ;;  %v170_v28 = vadd.f32 %v3071_v3, %v2968_v18 }
 0xc90   :  { %v555_v30 = vpop.permute.xlu1 %554 }
 0xc91   :  { %v557_v31 = vadd.f32 %v555_v30, %v547_v29 }
 0xc93   :  { %2790 = vtanh.f32 %v557_v31 }
 0xca0   :  { %v2791_v32 = vpop.eup %2790 }
 0xca1   :  { %560 = vrot.lane.b32.xlu0 %v2791_v32, %s2888_s5 }
 0xd13   :  { %v561_v33 = vpop.permute.xlu0 %560 }
 0xd14   :  { %v563_v34 = vmul.f32 %v2789_v26, %v561_v33 }
 0xd16   :  { %v564_v35 = vpack.c.bf16 %v563_v34, %v563_v34 }
 0xd18   :  { %566 = vrot.lane.b32.xlu1 %v564_v35, %s2889_s6 }
 0xd8a   :  { %v567_v36 = vpop.permute.xlu1 %566 }
 0xd8b   :  { %2526 = vmatmul.mubr.msk.bf16.vlgmr.msra.gmra.mxu1 %vm207_vm3, %v567_v36 }
 0xd8c   :  { %2538 = vmatpush3.bf16.msra.mxu1 %v2922_v5  ;;  %2541 = vmatprep.mubr.msk.bf16.mxu1 %vm2886_vm1, %v2885_v0 }
 0xd8d   :  { %2539 = vmatprep.subr.bf16.mxu1 %v2885_v0 }
 0xd90   :  { %2540 = vmatpush3.bf16.msra.mxu1 %v2945_v15 }
 0xd91   :  { %2553 = vmatprep.subr.bf16.mxu1 %v2885_v0 }
 0xe4b   :  { %v605_v38 = vpop.f32.mrf.mxu1 }
 0xe4c   :  { %v611_v39 = vadd.f32 %v605_v38, %v162_v37 }
 0xe4d   :  { %v2527_v40 = vpop.f32.mrf.mxu1 }
 0xe4e   :  { %2792 = vtanh.f32 %v611_v39  ;;  %v2273_v44 = vmul.f32 -1.442695, %v611_v39 }
 0xe4f   :  { %v608_v41 = vpop.f32.mrf.mxu1 }
 0xe50   :  { %2794 = vpow2.f32 %v2273_v44 }
 0xe51   :  { %v2528_v42 = vpop.f32.mrf.mxu1 }
 0xe5b   :  { %v2793_v43 = vpop.eup %2792 }
 0xe5c   :  { %621 = vrot.lane.b32.xlu0 %v2793_v43, %s2888_s5 }
 0xe5d   :  { %v2795_v45 = vpop.eup %2794 }
 0xe5e   :  { %v615_v46 = vadd.f32 1.0, %v2795_v45 }
 0xe60   :  { %2796 = vrcp.f32 %v615_v46 }
 0xe6d   :  { %v2797_v47 = vpop.eup %2796 }
 0xe6e   :  { %v619_v50 = vmul.f32 %v2797_v47, %v557_v31 }
 0xece   :  { %v622_v48 = vpop.permute.xlu0 %621 }
 0xecf   :  { %v624_v49 = vmul.f32 %v2797_v47, %v622_v48  ;;  %v175_v48 = vadd.f32 %v2968_v18, %v3075_v7 }
 0xed1   :  { %626 = vrot.lane.b32.xlu1 %v624_v49, %s2889_s6 }
 0xf43   :  { %v627_v51 = vpop.permute.xlu1 %626 }
 0xf44   :  { %v629_v52 = vadd.f32 %v627_v51, %v619_v50 }
 0xf46   :  { %2798 = vtanh.f32 %v629_v52 }
 0xf53   :  { %v2799_v53 = vpop.eup %2798 }
 0xf54   :  { %632 = vrot.lane.b32.xlu0 %v2799_v53, %s2888_s5 }
 0xfc6   :  { %v633_v54 = vpop.permute.xlu0 %632 }
 0xfc7   :  { %v635_v55 = vmul.f32 %v2797_v47, %v633_v54 }
 0xfc9   :  { %v636_v56 = vpack.c.bf16 %v635_v55, %v635_v55 }
 0xfcb   :  { %638 = vrot.lane.b32.xlu1 %v636_v56, %s2889_s6 }
0x103d   :  { %v639_v57 = vpop.permute.xlu1 %638 }
0x103e   :  { %2534 = vmatmul.mubr.msk.bf16.vlgmr.msra.gmra.mxu0 %vm207_vm3, %v639_v57 }
0x103f   :  { %2546 = vmatpush3.bf16.msra.mxu0 %v2922_v5  ;;  %2549 = vmatprep.mubr.msk.bf16.mxu0 %vm2886_vm1, %v2885_v0 }
0x1040   :  { %2547 = vmatprep.subr.bf16.mxu0 %v2885_v0 }
0x1043   :  { %2548 = vmatpush3.bf16.msra.mxu0 %v2945_v15 }
0x1044   :  { %2561 = vmatprep.subr.bf16.mxu0 %v2885_v0 }
0x10fe   :  { %v677_v59 = vpop.f32.mrf.mxu0 }
0x10ff   :  { %v683_v60 = vadd.f32 %v677_v59, %v167_v58 }
0x1100   :  { %v2535_v61 = vpop.f32.mrf.mxu0 }
0x1101   :  { %2800 = vtanh.f32 %v683_v60  ;;  %v2275_v4 = vmul.f32 -1.442695, %v683_v60 }
0x1102   :  { %v680_v62 = vpop.f32.mrf.mxu0 }
0x1103   :  { %2802 = vpow2.f32 %v2275_v4 }
0x1104   :  { %v2536_v63 = vpop.f32.mrf.mxu0 }
0x110e   :  { %v2801_v2 = vpop.eup %2800 }
0x110f   :  { %693 = vrot.lane.b32.xlu0 %v2801_v2, %s2888_s5 }
0x1110   :  { %v2803_v14 = vpop.eup %2802 }
0x1111   :  { %v687_v16 = vadd.f32 1.0, %v2803_v14 }
0x1113   :  { %2804 = vrcp.f32 %v687_v16 }
0x1120   :  { %v2805_v17 = vpop.eup %2804 }
0x1121   :  { %v691_v1 = vmul.f32 %v2805_v17, %v629_v52 }
0x1181   :  { %v694_v19 = vpop.permute.xlu0 %693 }
0x1182   :  { %v696_v20 = vmul.f32 %v2805_v17, %v694_v19 }
0x1184   :  { %698 = vrot.lane.b32.xlu1 %v696_v20, %s2889_s6 }
0x11f6   :  { %v699_v21 = vpop.permute.xlu1 %698 }
0x11f7   :  { %v701_v22 = vadd.f32 %v699_v21, %v691_v1 }
0x11f9   :  { %2806 = vtanh.f32 %v701_v22 }
0x1206   :  { %v2807_v23 = vpop.eup %2806 }
0x1207   :  { %704 = vrot.lane.b32.xlu0 %v2807_v23, %s2888_s5 }
0x1279   :  { %v705_v24 = vpop.permute.xlu0 %704 }
0x127a   :  { %v707_v25 = vmul.f32 %v2805_v17, %v705_v24  ;;  %v178_v17 = vadd.f32 %v2968_v18, %v3079_v9 }
0x127c   :  { %v708_v26 = vpack.c.bf16 %v707_v25, %v707_v25 }
0x127e   :  { %710 = vrot.lane.b32.xlu1 %v708_v26, %s2889_s6 }
0x12f0   :  { %v711_v27 = vpop.permute.xlu1 %710 }
0x12f1   :  { %2542 = vmatmul.mubr.msk.bf16.vlgmr.msra.gmra.mxu1 %vm207_vm3, %v711_v27 }
0x12f2   :  { %2554 = vmatpush3.bf16.msra.mxu1 %v2922_v5  ;;  %2557 = vmatprep.mubr.msk.bf16.mxu1 %vm2886_vm1, %v2885_v0 }
0x12f3   :  { %2555 = vmatprep.subr.bf16.mxu1 %v2885_v0 }
0x12f6   :  { %2556 = vmatpush3.bf16.msra.mxu1 %v2945_v15 }
0x12f7   :  { %2569 = vmatprep.subr.bf16.mxu1 %v2885_v0 }
0x13b1   :  { %v749_v29 = vpop.f32.mrf.mxu1 }
0x13b2   :  { %v755_v30 = vadd.f32 %v749_v29, %v170_v28 }
0x13b3   :  { %v2543_v31 = vpop.f32.mrf.mxu1 }
0x13b4   :  { %2808 = vtanh.f32 %v755_v30  ;;  %v2277_v35 = vmul.f32 -1.442695, %v755_v30 }
0x13b5   :  { %v752_v32 = vpop.f32.mrf.mxu1 }
0x13b6   :  { %2810 = vpow2.f32 %v2277_v35 }
0x13b7   :  { %v2544_v33 = vpop.f32.mrf.mxu1 }
0x13c1   :  { %v2809_v34 = vpop.eup %2808 }
0x13c2   :  { %765 = vrot.lane.b32.xlu0 %v2809_v34, %s2888_s5 }
0x13c3   :  { %v2811_v36 = vpop.eup %2810 }
0x13c4   :  { %v759_v37 = vadd.f32 1.0, %v2811_v36 }
0x13c6   :  { %2812 = vrcp.f32 %v759_v37  ;;  %v183_v37 = vadd.f32 %v3073_v6, %v2968_v18 }
0x13d3   :  { %v2813_v38 = vpop.eup %2812 }
0x13d4   :  { %v763_v3 = vmul.f32 %v2813_v38, %v701_v22 }
0x1434   :  { %v766_v39 = vpop.permute.xlu0 %765 }
0x1435   :  { %v768_v40 = vmul.f32 %v2813_v38, %v766_v39 }
0x1437   :  { %770 = vrot.lane.b32.xlu1 %v768_v40, %s2889_s6 }
0x14a9   :  { %v771_v41 = vpop.permute.xlu1 %770 }
0x14aa   :  { %v773_v42 = vadd.f32 %v771_v41, %v763_v3 }
0x14ac   :  { %2814 = vtanh.f32 %v773_v42 }
0x14b9   :  { %v2815_v43 = vpop.eup %2814 }
0x14ba   :  { %776 = vrot.lane.b32.xlu0 %v2815_v43, %s2888_s5 }
0x152c   :  { %v777_v44 = vpop.permute.xlu0 %776 }
0x152d   :  { %v779_v45 = vmul.f32 %v2813_v38, %v777_v44 }
0x152f   :  { %v780_v46 = vpack.c.bf16 %v779_v45, %v779_v45 }
0x1531   :  { %782 = vrot.lane.b32.xlu1 %v780_v46, %s2889_s6 }
0x15a3   :  { %v783_v47 = vpop.permute.xlu1 %782 }
0x15a4   :  { %2550 = vmatmul.mubr.msk.bf16.vlgmr.msra.gmra.mxu0 %vm207_vm3, %v783_v47 }
0x15a5   :  { %2562 = vmatpush3.bf16.msra.mxu0 %v2922_v5  ;;  %2565 = vmatprep.mubr.msk.bf16.mxu0 %vm2886_vm1, %v2885_v0 }
0x15a6   :  { %2563 = vmatprep.subr.bf16.mxu0 %v2885_v0 }
0x15a9   :  { %2564 = vmatpush3.bf16.msra.mxu0 %v2945_v15 }
0x15aa   :  { %2577 = vmatprep.subr.bf16.mxu0 %v2885_v0 }
0x1664   :  { %v821_v49 = vpop.f32.mrf.mxu0 }
0x1665   :  { %v827_v50 = vadd.f32 %v821_v49, %v175_v48 }
0x1666   :  { %v2551_v51 = vpop.f32.mrf.mxu0 }
0x1667   :  { %2816 = vtanh.f32 %v827_v50  ;;  %v2279_v55 = vmul.f32 -1.442695, %v827_v50 }
0x1668   :  { %v824_v52 = vpop.f32.mrf.mxu0 }
0x1669   :  { %2818 = vpow2.f32 %v2279_v55 }
0x166a   :  { %v2552_v53 = vpop.f32.mrf.mxu0 }
0x1674   :  { %v2817_v54 = vpop.eup %2816 }
0x1675   :  { %837 = vrot.lane.b32.xlu0 %v2817_v54, %s2888_s5 }
0x1676   :  { %v2819_v56 = vpop.eup %2818 }
0x1677   :  { %v831_v57 = vadd.f32 1.0, %v2819_v56  ;;  %v186_v56 = vadd.f32 %v3077_v8, %v2968_v18 }
0x1679   :  { %2820 = vrcp.f32 %v831_v57 }
0x1686   :  { %v2821_v58 = vpop.eup %2820 }
0x1687   :  { %v835_v7 = vmul.f32 %v2821_v58, %v773_v42 }
0x16e7   :  { %v838_v59 = vpop.permute.xlu0 %837 }
0x16e8   :  { %v840_v60 = vmul.f32 %v2821_v58, %v838_v59 }
0x16ea   :  { %842 = vrot.lane.b32.xlu1 %v840_v60, %s2889_s6 }
0x175c   :  { %v843_v61 = vpop.permute.xlu1 %842 }
0x175d   :  { %v845_v62 = vadd.f32 %v843_v61, %v835_v7 }
0x175f   :  { %2822 = vtanh.f32 %v845_v62 }
0x176c   :  { %v2823_v63 = vpop.eup %2822 }
0x176d   :  { %848 = vrot.lane.b32.xlu0 %v2823_v63, %s2888_s5 }
0x17df   :  { %v849_v2 = vpop.permute.xlu0 %848 }
0x17e0   :  { %v851_v4 = vmul.f32 %v2821_v58, %v849_v2 }
0x17e2   :  { %v852_v14 = vpack.c.bf16 %v851_v4, %v851_v4 }
0x17e4   :  { %854 = vrot.lane.b32.xlu1 %v852_v14, %s2889_s6 }
0x1856   :  { %v855_v16 = vpop.permute.xlu1 %854 }
0x1857   :  { %2558 = vmatmul.mubr.msk.bf16.vlgmr.msra.gmra.mxu1 %vm207_vm3, %v855_v16 }
0x1858   :  { %2570 = vmatpush3.bf16.msra.mxu1 %v2922_v5  ;;  %2573 = vmatprep.mubr.msk.bf16.mxu1 %vm2886_vm1, %v2885_v0 }
0x1859   :  { %2571 = vmatprep.subr.bf16.mxu1 %v2885_v0 }
0x185c   :  { %2572 = vmatpush3.bf16.msra.mxu1 %v2945_v15 }
0x185d   :  { %2585 = vmatprep.subr.bf16.mxu1 %v2885_v0 }
0x1917   :  { %v893_v19 = vpop.f32.mrf.mxu1 }
0x1918   :  { %v899_v20 = vadd.f32 %v893_v19, %v178_v17 }
0x1919   :  { %v2559_v1 = vpop.f32.mrf.mxu1 }
0x191a   :  { %2824 = vtanh.f32 %v899_v20  ;;  %v2281_v24 = vmul.f32 -1.442695, %v899_v20 }
0x191b   :  { %v896_v21 = vpop.f32.mrf.mxu1 }
0x191c   :  { %2826 = vpow2.f32 %v2281_v24  ;;  %v191_v24 = vadd.f32 %v2968_v18, %v3083_v11 }
0x191d   :  { %v2560_v22 = vpop.f32.mrf.mxu1 }
0x1927   :  { %v2825_v23 = vpop.eup %2824 }
0x1928   :  { %909 = vrot.lane.b32.xlu0 %v2825_v23, %s2888_s5 }
0x1929   :  { %v2827_v25 = vpop.eup %2826 }
0x192a   :  { %v903_v26 = vadd.f32 1.0, %v2827_v25 }
0x192c   :  { %2828 = vrcp.f32 %v903_v26 }
0x1939   :  { %v2829_v27 = vpop.eup %2828 }
0x193a   :  { %v907_v9 = vmul.f32 %v2829_v27, %v845_v62 }
0x199a   :  { %v910_v28 = vpop.permute.xlu0 %909 }
0x199b   :  { %v912_v29 = vmul.f32 %v2829_v27, %v910_v28 }
0x199d   :  { %914 = vrot.lane.b32.xlu1 %v912_v29, %s2889_s6 }
0x1a0f   :  { %v915_v30 = vpop.permute.xlu1 %914 }
0x1a10   :  { %v917_v31 = vadd.f32 %v915_v30, %v907_v9 }
0x1a12   :  { %2830 = vtanh.f32 %v917_v31 }
0x1a1f   :  { %v2831_v32 = vpop.eup %2830 }
0x1a20   :  { %920 = vrot.lane.b32.xlu0 %v2831_v32, %s2888_s5 }
0x1a92   :  { %v921_v33 = vpop.permute.xlu0 %920 }
0x1a93   :  { %v923_v34 = vmul.f32 %v2829_v27, %v921_v33 }
0x1a95   :  { %v924_v35 = vpack.c.bf16 %v923_v34, %v923_v34 }
0x1a97   :  { %926 = vrot.lane.b32.xlu1 %v924_v35, %s2889_s6 }
0x1b09   :  { %v927_v36 = vpop.permute.xlu1 %926 }
0x1b0a   :  { %2566 = vmatmul.mubr.msk.bf16.vlgmr.msra.gmra.mxu0 %vm207_vm3, %v927_v36 }
0x1b0b   :  { %2578 = vmatpush3.bf16.msra.mxu0 %v2922_v5  ;;  %2581 = vmatprep.mubr.msk.bf16.mxu0 %vm2886_vm1, %v2885_v0 }
0x1b0c   :  { %2579 = vmatprep.subr.bf16.mxu0 %v2885_v0 }
0x1b0f   :  { %2580 = vmatpush3.bf16.msra.mxu0 %v2945_v15 }
0x1b10   :  { %2593 = vmatprep.subr.bf16.mxu0 %v2885_v0 }
0x1bca   :  { %v965_v38 = vpop.f32.mrf.mxu0 }
0x1bcb   :  { %v971_v39 = vadd.f32 %v965_v38, %v183_v37 }
0x1bcc   :  { %v2567_v40 = vpop.f32.mrf.mxu0 }
0x1bcd   :  { %2832 = vtanh.f32 %v971_v39  ;;  %v2283_v43 = vmul.f32 -1.442695, %v971_v39 }
0x1bce   :  { %v968_v3 = vpop.f32.mrf.mxu0 }
0x1bcf   :  { %2834 = vpow2.f32 %v2283_v43 }
0x1bd0   :  { %v2568_v41 = vpop.f32.mrf.mxu0 }
0x1bda   :  { %v2833_v42 = vpop.eup %2832 }
0x1bdb   :  { %981 = vrot.lane.b32.xlu0 %v2833_v42, %s2888_s5  ;;  %v194_v42 = vadd.f32 %v2968_v18, %v3087_v13 }
0x1bdc   :  { %v2835_v44 = vpop.eup %2834 }
0x1bdd   :  { %v975_v45 = vadd.f32 1.0, %v2835_v44 }
0x1bdf   :  { %2836 = vrcp.f32 %v975_v45 }
0x1bec   :  { %v2837_v46 = vpop.eup %2836 }
0x1bed   :  { %v979_v6 = vmul.f32 %v2837_v46, %v917_v31 }
0x1c4d   :  { %v982_v47 = vpop.permute.xlu0 %981 }
0x1c4e   :  { %v984_v48 = vmul.f32 %v2837_v46, %v982_v47 }
0x1c50   :  { %986 = vrot.lane.b32.xlu1 %v984_v48, %s2889_s6 }
0x1cc2   :  { %v987_v49 = vpop.permute.xlu1 %986 }
0x1cc3   :  { %v989_v50 = vadd.f32 %v987_v49, %v979_v6 }
0x1cc5   :  { %2838 = vtanh.f32 %v989_v50 }
0x1cd2   :  { %v2839_v51 = vpop.eup %2838 }
0x1cd3   :  { %992 = vrot.lane.b32.xlu0 %v2839_v51, %s2888_s5 }
0x1d45   :  { %v993_v52 = vpop.permute.xlu0 %992 }
0x1d46   :  { %v995_v53 = vmul.f32 %v2837_v46, %v993_v52 }
0x1d48   :  { %v996_v54 = vpack.c.bf16 %v995_v53, %v995_v53 }
0x1d4a   :  { %998 = vrot.lane.b32.xlu1 %v996_v54, %s2889_s6 }
0x1dbc   :  { %v999_v55 = vpop.permute.xlu1 %998 }
0x1dbd   :  { %2574 = vmatmul.mubr.msk.bf16.vlgmr.msra.gmra.mxu1 %vm207_vm3, %v999_v55 }
0x1dbe   :  { %2586 = vmatpush3.bf16.msra.mxu1 %v2922_v5  ;;  %2589 = vmatprep.mubr.msk.bf16.mxu1 %vm2886_vm1, %v2885_v0 }
0x1dbf   :  { %2587 = vmatprep.subr.bf16.mxu1 %v2885_v0 }
0x1dc2   :  { %2588 = vmatpush3.bf16.msra.mxu1 %v2945_v15 }
0x1dc3   :  { %2601 = vmatprep.subr.bf16.mxu1 %v2885_v0 }
0x1e7d   :  { %v1037_v57 = vpop.f32.mrf.mxu1 }
0x1e7e   :  { %v1043_v58 = vadd.f32 %v1037_v57, %v186_v56 }
0x1e7f   :  { %v2575_v59 = vpop.f32.mrf.mxu1 }
0x1e80   :  { %2840 = vtanh.f32 %v1043_v58  ;;  %v2285_v62 = vmul.f32 -1.442695, %v1043_v58  ;;  %v3213_v58 = vld [vmem:[%s3432_s2 + $0xf0] ss:$0 sm:$0xff] }
0x1e81   :  { %v1040_v60 = vpop.f32.mrf.mxu1  ;;  %v199_v59 = vadd.f32 %v3213_v58, %v3081_v10  ;;  %v21_v10 = vld [vmem:[%s3432_s2 + $0x30] sm:$0xff] }
0x1e82   :  { %2842 = vpow2.f32 %v2285_v62 }
0x1e83   :  { %v2576_v7 = vpop.f32.mrf.mxu1 }
0x1e8d   :  { %v2841_v61 = vpop.eup %2840 }
0x1e8e   :  { %1053 = vrot.lane.b32.xlu0 %v2841_v61, %s2888_s5 }
0x1e8f   :  { %v2843_v63 = vpop.eup %2842 }
0x1e90   :  { %v1047_v2 = vadd.f32 1.0, %v2843_v63 }
0x1e92   :  { %2844 = vrcp.f32 %v1047_v2 }
0x1e9f   :  { %v2845_v4 = vpop.eup %2844 }
0x1ea0   :  { %v1051_v8 = vmul.f32 %v2845_v4, %v989_v50 }
0x1f00   :  { %v1054_v14 = vpop.permute.xlu0 %1053 }
0x1f01   :  { %v1056_v16 = vmul.f32 %v2845_v4, %v1054_v14 }
0x1f03   :  { %1058 = vrot.lane.b32.xlu1 %v1056_v16, %s2889_s6 }
0x1f75   :  { %v1059_v17 = vpop.permute.xlu1 %1058 }
0x1f76   :  { %v1061_v19 = vadd.f32 %v1059_v17, %v1051_v8 }
0x1f78   :  { %2846 = vtanh.f32 %v1061_v19 }
0x1f85   :  { %v2847_v20 = vpop.eup %2846 }
0x1f86   :  { %1064 = vrot.lane.b32.xlu0 %v2847_v20, %s2888_s5  ;;  %v20_v20 = vld [vmem:[%s3432_s2 + $0x28] sm:$0xff] }
0x1ff8   :  { %v1065_v1 = vpop.permute.xlu0 %1064 }
0x1ff9   :  { %v1067_v21 = vmul.f32 %v2845_v4, %v1065_v1  ;;  %v1356_v1 = vld [vmem:[%s3434_s0] sm:$0xff] }
0x1ffb   :  { %v1068_v22 = vpack.c.bf16 %v1067_v21, %v1067_v21  ;;  %v1357_v21 = vld [vmem:[%s3434_s0 + $0x8] sm:$0xff] }
0x1ffd   :  { %1070 = vrot.lane.b32.xlu1 %v1068_v22, %s2889_s6  ;;  %v1358_v22 = vld [vmem:[%s3434_s0 + $0x10] sm:$0xff] }
0x206f   :  { %v1071_v23 = vpop.permute.xlu1 %1070 }
0x2070   :  { %2582 = vmatmul.mubr.msk.bf16.vlgmr.msra.gmra.mxu0 %vm207_vm3, %v1071_v23  ;;  %v1359_v23 = vld [vmem:[%s3434_s0 + $0x18] sm:$0xff] }
0x2071   :  { %2594 = vmatpush3.bf16.msra.mxu0 %v2922_v5  ;;  %2597 = vmatprep.mubr.msk.bf16.mxu0 %vm2886_vm1, %v2885_v0 }
0x2072   :  { %2595 = vmatprep.subr.bf16.mxu0 %v2885_v0 }
0x2075   :  { %2596 = vmatpush3.bf16.msra.mxu0 %v2945_v15 }
0x2076   :  { %2609 = vmatprep.subr.mxu0 %v21_v10 }
0x2130   :  { %v1109_v25 = vpop.f32.mrf.mxu0 }
0x2131   :  { %v1115_v26 = vadd.f32 %v1109_v25, %v191_v24  ;;  %v1360_v24 = vld [vmem:[%s3434_s0 + $0x20] sm:$0xff]  ;;  %v1361_v25 = vld [vmem:[%s3434_s0 + $0x28] sm:$0xff] }
0x2132   :  { %v2583_v27 = vpop.f32.mrf.mxu0 }
0x2133   :  { %2848 = vtanh.f32 %v1115_v26  ;;  %v2287_v30 = vmul.f32 -1.442695, %v1115_v26 }
0x2134   :  { %v1112_v28 = vpop.f32.mrf.mxu0 }
0x2135   :  { %2850 = vpow2.f32 %v2287_v30 }
0x2136   :  { %v2584_v29 = vpop.f32.mrf.mxu0 }
0x2140   :  { %v2849_v9 = vpop.eup %2848 }
0x2141   :  { %1125 = vrot.lane.b32.xlu0 %v2849_v9, %s2888_s5 }
0x2142   :  { %v2851_v31 = vpop.eup %2850 }
0x2143   :  { %v1119_v32 = vadd.f32 1.0, %v2851_v31 }
0x2145   :  { %2852 = vrcp.f32 %v1119_v32 }
0x2152   :  { %v2853_v33 = vpop.eup %2852 }
0x2153   :  { %v1123_v11 = vmul.f32 %v2853_v33, %v1061_v19 }
0x21b3   :  { %v1126_v34 = vpop.permute.xlu0 %1125 }
0x21b4   :  { %v1128_v35 = vmul.f32 %v2853_v33, %v1126_v34 }
0x21b6   :  { %1130 = vrot.lane.b32.xlu1 %v1128_v35, %s2889_s6 }
0x2228   :  { %v1131_v36 = vpop.permute.xlu1 %1130 }
0x2229   :  { %v1133_v37 = vadd.f32 %v1131_v36, %v1123_v11  ;;  %v38_v36 = vld [vmem:[%s3432_s2 + $0xb8] sm:$0xff] }
0x222b   :  { %2854 = vtanh.f32 %v1133_v37 }
0x2238   :  { %v2855_v38 = vpop.eup %2854 }
0x2239   :  { %1136 = vrot.lane.b32.xlu0 %v2855_v38, %s2888_s5 }
0x22ab   :  { %v1137_v39 = vpop.permute.xlu0 %1136 }
0x22ac   :  { %v1139_v40 = vmul.f32 %v2853_v33, %v1137_v39  ;;  %v3262_v39 = vld [vmem:[%s3432_s2 + $0xc0] sm:$0xff] }
0x22ae   :  { %v1140_v3 = vpack.c.bf16 %v1139_v40, %v1139_v40  ;;  %v3267_v40 = vld [vmem:[%s3432_s2 + $0xc8] sm:$0xff] }
0x22b0   :  { %1142 = vrot.lane.b32.xlu1 %v1140_v3, %s2889_s6  ;;  %v3276_v3 = vld [vmem:[%s3432_s2 + $0xd0] sm:$0xff] }
0x2322   :  { %v1143_v41 = vpop.permute.xlu1 %1142 }
0x2323   :  { %2590 = vmatmul.mubr.msk.bf16.vlgmr.msra.gmra.mxu1 %vm207_vm3, %v1143_v41  ;;  %v3281_v41 = vld [vmem:[%s3432_s2 + $0xd8] sm:$0xff] }
0x2324   :  { %2602 = vmatpush3.bf16.msra.mxu1 %v2922_v5  ;;  %2605 = vmatprep.mubr.msk.bf16.mxu1 %vm2886_vm1, %v2885_v0 }
0x2325   :  { %2603 = vmatprep.subr.bf16.mxu1 %v2885_v0 }
0x2328   :  { %2604 = vmatpush3.bf16.msra.mxu1 %v2945_v15 }
0x23e3   :  { %v1181_v43 = vpop.f32.mrf.mxu1 }
0x23e4   :  { %v1187_v44 = vadd.f32 %v1181_v43, %v194_v42  ;;  %v3290_v42 = vld [vmem:[%s3432_s2 + $0xe0] sm:$0xff]  ;;  %v25_v43 = vld [vmem:[%s3432_s2 + $0x50] sm:$0xff] }
0x23e5   :  { %v2591_v45 = vpop.f32.mrf.mxu1 }
0x23e6   :  { %2856 = vtanh.f32 %v1187_v44  ;;  %v2289_v5 = vmul.f32 -1.442695, %v1187_v44  ;;  %v24_v44 = vld [vmem:[%s3432_s2 + $0x48] sm:$0xff]  ;;  %v23_v45 = vld [vmem:[%s3432_s2 + $0x40] sm:$0xff] }
0x23e7   :  { %v1184_v46 = vpop.f32.mrf.mxu1 }
0x23e8   :  { %2858 = vpow2.f32 %v2289_v5  ;;  %v22_v46 = vld [vmem:[%s3432_s2 + $0x38] sm:$0xff] }
0x23e9   :  { %v2592_v47 = vpop.f32.mrf.mxu1 }
0x23ea   :  { %v202_v47 = vadd.f32 %v3213_v58, %v3085_v12 }
0x23f3   :  { %v2857_v48 = vpop.eup %2856 }
0x23f4   :  { %1197 = vrot.lane.b32.xlu0 %v2857_v48, %s2888_s5 }
0x23f5   :  { %v2859_v6 = vpop.eup %2858 }
0x23f6   :  { %v1191_v49 = vadd.f32 1.0, %v2859_v6 }
0x23f8   :  { %2860 = vrcp.f32 %v1191_v49 }
0x2405   :  { %v2861_v50 = vpop.eup %2860 }
0x2406   :  { %v1195_v18 = vmul.f32 %v2861_v50, %v1133_v37 }
0x2466   :  { %v1198_v51 = vpop.permute.xlu0 %1197 }
0x2467   :  { %v1200_v15 = vmul.f32 %v2861_v50, %v1198_v51  ;;  %v2300_v51 = vld [vmem:[%s3432_s2 + $0xf1] ss:$0 sm:$0xff] }
0x2469   :  { %1202 = vrot.lane.b32.xlu1 %v1200_v15, %s2889_s6 }
0x24db   :  { %v1203_v13 = vpop.permute.xlu1 %1202 }
0x24dc   :  { %v1205_v52 = vadd.f32 %v1203_v13, %v1195_v18 }
0x24de   :  { %2862 = vtanh.f32 %v1205_v52 }
0x24eb   :  { %v2863_v53 = vpop.eup %2862 }
0x24ec   :  { %1208 = vrot.lane.b32.xlu0 %v2863_v53, %s2888_s5 }
0x255e   :  { %v1209_v54 = vpop.permute.xlu0 %1208 }
0x255f   :  { %v1211_v55 = vmul.f32 %v2861_v50, %v1209_v54 }
0x2561   :  { %v1212_v56 = vpack.c.bf16 %v1211_v55, %v1211_v55 }
0x2563   :  { %1214 = vrot.lane.b32.xlu1 %v1212_v56, %s2889_s6 }
0x25d5   :  { %v1215_v57 = vpop.permute.xlu1 %1214 }
0x25d6   :  { %2598 = vmatmul.mubr.msk.bf16.vlgmr.msra.gmra.mxu0 %vm207_vm3, %v1215_v57 }
0x25d7   :  { %2610 = vmatpush3.msra.mxu0 %v21_v10  ;;  %2613 = vmatprep.mubr.msk.f32.mxu0 %vm1362_vm4, %v1356_v1 }
0x25d8   :  { %2611 = vmatprep.subr.mxu0 %v20_v20 }
0x25d9   :  { %2612 = vmatpush3.msra.mxu0 %v20_v20 }
0x25da   :  { %2643 = vmatprep.subr.mxu0 %v25_v43 }
0x25de   :  { %2614 = vmatmul.mubr.msk.f32.vlgmr.msra.gmra.mxu0 %vm1362_vm4, %v1357_v21 }
0x25df   :  { %2616 = vmatprep.mubr.msk.f32.mxu0 %vm1362_vm4, %v1358_v22  ;;  %2644 = vmatpush3.msra.mxu0 %v25_v43 }
0x25e0   :  { %2645 = vmatprep.subr.mxu0 %v24_v44 }
0x25e1   :  { %2646 = vmatpush3.msra.mxu0 %v24_v44 }
0x25e2   :  { %2617 = vmatmul.mubr.msk.f32.gmra.mxu0 %vm1362_vm4, %v1359_v23  ;;  %2647 = vmatprep.subr.mxu0 %v23_v45 }
0x25e3   :  { %2619 = vmatprep.mubr.msk.f32.mxu0 %vm1362_vm4, %v1360_v24  ;;  %2648 = vmatpush3.msra.mxu0 %v23_v45 }
0x25e4   :  { %2649 = vmatprep.subr.mxu0 %v22_v46 }
0x25e5   :  { %2650 = vmatpush3.msra.mxu0 %v22_v46 }
0x25e6   :  { %2620 = vmatmul.mubr.msk.f32.gmra.mxu0 %vm1362_vm4, %v1361_v25  ;;  %2681 = vmatprep.subr.mxu0 %v25_v43 }
0x2696   :  { %v1253_v60 = vpop.f32.mrf.mxu0 }
0x2697   :  { %v1259_v7 = vadd.f32 %v1253_v60, %v199_v59 }
0x2698   :  { %v2599_v61 = vpop.f32.mrf.mxu0 }
0x2699   :  { %2864 = vtanh.f32 %v1259_v7  ;;  %v2291_v4 = vmul.f32 -1.442695, %v1259_v7 }
0x269a   :  { %v1256_v62 = vpop.f32.mrf.mxu0 }
0x269b   :  { %2866 = vpow2.f32 %v2291_v4 }
0x269c   :  { %v2600_v63 = vpop.f32.mrf.mxu0 }
0x269e   :  { %v2615_v9 = vpop.f32.mrf.mxu0 }
0x26a0   :  { %v1447_v30 = vpop.f32.mrf.mxu0 }
0x26a2   :  { %v2618_v31 = vpop.f32.mrf.mxu0 }
0x26a4   :  { %v1457_v32 = vpop.f32.mrf.mxu0 }
0x26a6   :  { %v2865_v2 = vpop.eup %2864  ;;  %v2621_v33 = vpop.f32.mrf.mxu0 }
0x26a7   :  { %1269 = vrot.lane.b32.xlu0 %v2865_v2, %s2888_s5  ;;  %2622 = vmatprep.subr.mxu1 %v2621_v33 }
0x26a8   :  { %v2867_v14 = vpop.eup %2866  ;;  %v1467_v38 = vpop.f32.mrf.mxu0 }
0x26a9   :  { %v1263_v16 = vadd.f32 1.0, %v2867_v14 }
0x26ab   :  { %2868 = vrcp.f32 %v1263_v16 }
0x26b8   :  { %v2869_v8 = vpop.eup %2868 }
0x26b9   :  { %v1267_v26 = vmul.f32 %v2869_v8, %v1205_v52 }
0x2719   :  { %v1270_v17 = vpop.permute.xlu0 %1269 }
0x271a   :  { %v1272_v19 = vmul.f32 %v2869_v8, %v1270_v17 }
0x271c   :  { %1274 = vrot.lane.b32.xlu1 %v1272_v19, %s2889_s6 }
0x278e   :  { %v1275_v27 = vpop.permute.xlu1 %1274 }
0x278f   :  { %v3249_v28 = vadd.f32 %v1275_v27, %v1267_v26 }
0x2791   :  { %2870 = vtanh.f32 %v3249_v28 }
0x279e   :  { %v2871_v29 = vpop.eup %2870 }
0x279f   :  { %1280 = vrot.lane.b32.xlu0 %v2871_v29, %s2888_s5 }
0x2811   :  { %v1281_v34 = vpop.permute.xlu0 %1280 }
0x2812   :  { %v1283_v35 = vmul.f32 %v2869_v8, %v1281_v34 }
0x2814   :  { %v1284_v11 = vpack.c.bf16 %v1283_v35, %v1283_v35 }
0x2816   :  { %1286 = vrot.lane.b32.xlu1 %v1284_v11, %s2889_s6 }
0x2888   :  { %v1287_v37 = vpop.permute.xlu1 %1286 }
0x2889   :  { %2606 = vmatmul.mubr.msk.bf16.vlgmr.msra.gmra.mxu1 %vm207_vm3, %v1287_v37 }
0x288a   :  { %2623 = vmatpush3.msra.mxu1 %v2621_v33  ;;  %2634 = vmatprep.mubr.msk.f32.mxu1 %vm1480_vm5, %v38_v36 }
0x288b   :  { %2624 = vmatprep.subr.mxu1 %v1467_v38 }
0x288c   :  { %2625 = vmatpush3.msra.mxu1 %v1467_v38 }
0x288d   :  { %2626 = vmatprep.subr.mxu1 %v2618_v31 }
0x288e   :  { %2627 = vmatpush3.msra.mxu1 %v2618_v31  ;;  %v3340_v31 = vld [vmem:[%s3432_s2 + $0xf2] ss:$0 sm:$0xff] }
0x288f   :  { %2628 = vmatprep.subr.mxu1 %v1457_v32 }
0x2890   :  { %2629 = vmatpush3.msra.mxu1 %v1457_v32 }
0x2891   :  { %2630 = vmatprep.subr.mxu1 %v2615_v9 }
0x2892   :  { %2631 = vmatpush3.msra.mxu1 %v2615_v9 }
0x2893   :  { %2632 = vmatprep.subr.mxu1 %v1447_v30 }
0x2894   :  { %2633 = vmatpush3.msra.mxu1 %v1447_v30 }
0x2895   :  { %2635 = vmatmul.mubr.msk.f32.vlgmr.msra.gmra.mxu1 %vm1480_vm5, %v3262_v39 }
0x2896   :  { %2637 = vmatprep.mubr.msk.f32.mxu1 %vm1480_vm5, %v3267_v40 }
0x2899   :  { %2638 = vmatmul.mubr.msk.f32.gmra.mxu1 %vm1480_vm5, %v3276_v3 }
0x289a   :  { %2640 = vmatprep.mubr.msk.f32.mxu1 %vm1480_vm5, %v3281_v41 }
0x289d   :  { %2641 = vmatmul.mubr.msk.f32.gmra.mxu1 %vm1480_vm5, %v3290_v42 }
0x289e   :  { %2672 = vmatprep.mubr.msk.f32.mxu1 %vm1480_vm5, %v38_v36 }
0x2949   :  { %v1325_v48 = vpop.f32.mrf.mxu1 }
0x294a   :  { %v1331_v5 = vadd.f32 %v1325_v48, %v202_v47  ;;  %v33_v47 = vld [vmem:[%s3432_s2 + $0x90] sm:$0xff]  ;;  %v32_v48 = vld [vmem:[%s3432_s2 + $0x88] sm:$0xff] }
0x294b   :  { %v2607_v6 = vpop.f32.mrf.mxu1 }
0x294c   :  { %2872 = vtanh.f32 %v1331_v5  ;;  %v2293_v14 = vmul.f32 -1.442695, %v1331_v5  ;;  %v31_v5 = vld [vmem:[%s3432_s2 + $0x80] sm:$0xff] }
0x294d   :  { %v1328_v49 = vpop.f32.mrf.mxu1 }
0x294e   :  { %2874 = vpow2.f32 %v2293_v14 }
0x294f   :  { %v2608_v50 = vpop.f32.mrf.mxu1 }
0x2955   :  { %v2636_v15 = vpop.f32.mrf.mxu1 }
0x2956   :  { %v1571_v18 = vadd.f32 %v2636_v15, %v2300_v51 }
0x2957   :  { %v1565_v13 = vpop.f32.mrf.mxu1 }
0x2958   :  { %v1566_v52 = vadd.f32 %v2300_v51, %v1565_v13  ;;  %v1595_v12 = vmax.f32 %v1571_v18, 0.0  ;;  %v44_v13 = vld [vmem:[%s3432_s2 + $0xe8] sm:$0xff] }
0x2959   :  { %v2873_v53 = vpop.eup %2872  ;;  %v2639_v54 = vpop.f32.mrf.mxu1 }
0x295a   :  { %v1594_v55 = vmax.f32 %v1566_v52, 0.0  ;;  %1341 = vrot.lane.b32.xlu0 %v2873_v53, %s2888_s5  ;;  %v1581_v56 = vadd.f32 %v2639_v54, %v2300_v51  ;;  %v29_v52 = vld [vmem:[%s3432_s2 + $0x70] sm:$0xff]  ;;  %v28_v53 = vld [vmem:[%s3432_s2 + $0x68] sm:$0xff]  ;;  %v27_v54 = vld [vmem:[%s3432_s2 + $0x60] sm:$0xff] }
0x295b   :  { %v1575_v57 = vpop.f32.mrf.mxu1  ;;  %v2875_v16 = vpop.eup %2874 }
0x295c   :  { %v1576_v58 = vadd.f32 %v2300_v51, %v1575_v57  ;;  %2651 = vmatprep.mubr.msk.f32.mxu0 %vm207_vm3, %v1594_v55  ;;  %v1597_v7 = vmax.f32 %v1581_v56, 0.0  ;;  %v1335_v8 = vadd.f32 1.0, %v2875_v16  ;;  %v26_v55 = vld [vmem:[%s3432_s2 + $0x58] sm:$0xff] }
0x295d   :  { %v2642_v59 = vpop.f32.mrf.mxu1  ;;  %2652 = vmatmul.mubr.msk.f32.vlgmr.msra.gmra.mxu0 %vm207_vm3, %v1595_v12  ;;  %v30_v56 = vld [vmem:[%s3432_s2 + $0x78] sm:$0xff] }
0x295e   :  { %v1596_v60 = vmax.f32 %v1576_v58, 0.0  ;;  %2682 = vmatpush3.msra.mxu0 %v25_v43  ;;  %v1591_v61 = vadd.f32 %v2642_v59, %v2300_v51  ;;  %2876 = vrcp.f32 %v1335_v8 }
0x295f   :  { %v1585_v62 = vpop.f32.mrf.mxu1  ;;  %2683 = vmatprep.subr.mxu0 %v24_v44 }
0x2960   :  { %v1586_v63 = vadd.f32 %v2300_v51, %v1585_v62  ;;  %2654 = vmatprep.mubr.msk.f32.mxu0 %vm207_vm3, %v1596_v60  ;;  %2684 = vmatpush3.msra.mxu0 %v24_v44  ;;  %v1599_v4 = vmax.f32 %v1591_v61, 0.0  ;;  %v37_v61 = vld [vmem:[%s3432_s2 + $0xb0] sm:$0xff]  ;;  %v36_v62 = vld [vmem:[%s3432_s2 + $0xa8] sm:$0xff] }
0x2961   :  { %2655 = vmatmul.mubr.msk.f32.gmra.mxu0 %vm207_vm3, %v1597_v7  ;;  %2685 = vmatprep.subr.mxu0 %v23_v45 }
0x2962   :  { %v1598_v2 = vmax.f32 %v1586_v63, 0.0  ;;  %2686 = vmatpush3.msra.mxu0 %v23_v45  ;;  %v35_v63 = vld [vmem:[%s3432_s2 + $0xa0] sm:$0xff] }
0x2963   :  { %2687 = vmatprep.subr.mxu0 %v22_v46 }
0x2964   :  { %2657 = vmatprep.mubr.msk.f32.mxu0 %vm207_vm3, %v1598_v2  ;;  %2688 = vmatpush3.msra.mxu0 %v22_v46  ;;  %v34_v2 = vld [vmem:[%s3432_s2 + $0x98] sm:$0xff] }
0x2965   :  { %2658 = vmatmul.mubr.msk.f32.gmra.mxu0 %vm207_vm3, %v1599_v4  ;;  %2713 = vmatprep.subr.mxu0 %v2885_v0  ;;  %v2329_v4 = vld [vmem:[%s3432_s2 + $0xf3] ss:$0 sm:$0xff] }
0x296b   :  { %v2877_v17 = vpop.eup %2876 }
0x296c   :  { %v1339_v25 = vmul.f32 %v2877_v17, %v3249_v28 }
0x29cc   :  { %v1342_v19 = vpop.permute.xlu0 %1341 }
0x29cd   :  { %v1344_v10 = vmul.f32 %v2877_v17, %v1342_v19 }
0x29cf   :  { %1346 = vrot.lane.b32.xlu1 %v1344_v10, %s2889_s6 }
0x2a1d   :  { %v2653_v20 = vpop.f32.mrf.mxu0 }
0x2a1f   :  { %v1684_v1 = vpop.f32.mrf.mxu0 }
0x2a21   :  { %v2656_v21 = vpop.f32.mrf.mxu0 }
0x2a23   :  { %v1694_v22 = vpop.f32.mrf.mxu0 }
0x2a25   :  { %v2659_v23 = vpop.f32.mrf.mxu0 }
0x2a26   :  { %2660 = vmatprep.subr.mxu1 %v2659_v23 }
0x2a27   :  { %v1704_v24 = vpop.f32.mrf.mxu0  ;;  %2661 = vmatpush3.msra.mxu1 %v2659_v23 }
0x2a28   :  { %2662 = vmatprep.subr.mxu1 %v1704_v24 }
0x2a29   :  { %2663 = vmatpush3.msra.mxu1 %v1704_v24 }
0x2a2a   :  { %2664 = vmatprep.subr.mxu1 %v2656_v21 }
0x2a2b   :  { %2665 = vmatpush3.msra.mxu1 %v2656_v21 }
0x2a2c   :  { %2666 = vmatprep.subr.mxu1 %v1694_v22 }
0x2a2d   :  { %2667 = vmatpush3.msra.mxu1 %v1694_v22 }
0x2a2e   :  { %2668 = vmatprep.subr.mxu1 %v2653_v20 }
0x2a2f   :  { %2669 = vmatpush3.msra.mxu1 %v2653_v20 }
0x2a30   :  { %2670 = vmatprep.subr.mxu1 %v1684_v1 }
0x2a31   :  { %2671 = vmatpush3.msra.mxu1 %v1684_v1 }
0x2a32   :  { %2673 = vmatmul.mubr.msk.f32.vlgmr.msra.gmra.mxu1 %vm1480_vm5, %v3262_v39  ;;  %2698 = vmatprep.subr.mxu1 %v2885_v0 }
0x2a33   :  { %2675 = vmatprep.mubr.msk.f32.mxu1 %vm1480_vm5, %v3267_v40 }
0x2a36   :  { %2676 = vmatmul.mubr.msk.f32.gmra.mxu1 %vm1480_vm5, %v3276_v3 }
0x2a37   :  { %2678 = vmatprep.mubr.msk.f32.mxu1 %vm1480_vm5, %v3281_v41 }
0x2a3a   :  { %2679 = vmatmul.mubr.msk.f32.gmra.mxu1 %vm1480_vm5, %v3290_v42 }
0x2a3b   :  { %2710 = vmatprep.mubr.msk.f32.mxu1 %vm2886_vm1, %v2885_v0 }
0x2a41   :  { %v1347_v26 = vpop.permute.xlu1 %1346 }
0x2a42   :  { %v1349_v27 = vadd.f32 %v1347_v26, %v1339_v25 }
0x2a44   :  { %2878 = vtanh.f32 %v1349_v27 }
0x2a51   :  { %v2879_v29 = vpop.eup %2878 }
0x2a52   :  { %1352 = vrot.lane.b32.xlu0 %v2879_v29, %s2888_s5 }
0x2ac4   :  { %v1353_v9 = vpop.permute.xlu0 %1352 }
0x2ac5   :  { %v1355_v30 = vmul.f32 %v2877_v17, %v1353_v9 }
0x2ac7   :  { %2078 = vrot.lane.b32.xlu1 %v1355_v30, %s2889_s6 }
0x2af2   :  { %v2674_v32 = vpop.f32.mrf.mxu1 }
0x2af3   :  { %v1789_v33 = vadd.f32 %v2674_v32, %v3340_v31 }
0x2af4   :  { %v1783_v34 = vpop.f32.mrf.mxu1 }
0x2af5   :  { %v1784_v28 = vadd.f32 %v3340_v31, %v1783_v34  ;;  %v1813_v36 = vmax.f32 %v1789_v33, 0.0 }
0x2af6   :  { %v2677_v35 = vpop.f32.mrf.mxu1 }
0x2af7   :  { %v1812_v11 = vmax.f32 %v1784_v28, 0.0  ;;  %v1799_v37 = vadd.f32 %v2677_v35, %v3340_v31 }
0x2af8   :  { %v1793_v38 = vpop.f32.mrf.mxu1 }
0x2af9   :  { %v1794_v39 = vadd.f32 %v3340_v31, %v1793_v38  ;;  %2689 = vmatprep.mubr.msk.f32.mxu0 %vm207_vm3, %v1812_v11  ;;  %v1815_v41 = vmax.f32 %v1799_v37, 0.0 }
0x2afa   :  { %v2680_v40 = vpop.f32.mrf.mxu1  ;;  %2690 = vmatmul.mubr.msk.f32.vlgmr.msra.gmra.mxu0 %vm207_vm3, %v1813_v36 }
0x2afb   :  { %v1814_v3 = vmax.f32 %v1794_v39, 0.0  ;;  %v1809_v42 = vadd.f32 %v2680_v40, %v3340_v31  ;;  %2714 = vmatpush3.msra.mxu0 %v33_v47 }
0x2afc   :  { %v1803_v43 = vpop.f32.mrf.mxu1  ;;  %2715 = vmatprep.subr.mxu0 %v2885_v0 }
0x2afd   :  { %v1804_v44 = vadd.f32 %v3340_v31, %v1803_v43  ;;  %2692 = vmatprep.mubr.msk.f32.mxu0 %vm207_vm3, %v1814_v3  ;;  %v1817_v46 = vmax.f32 %v1809_v42, 0.0  ;;  %2716 = vmatpush3.msra.mxu0 %v32_v48 }
0x2afe   :  { %2693 = vmatmul.mubr.msk.f32.gmra.mxu0 %vm207_vm3, %v1815_v41  ;;  %2717 = vmatprep.subr.mxu0 %v2885_v0 }
0x2aff   :  { %v1816_v45 = vmax.f32 %v1804_v44, 0.0  ;;  %2718 = vmatpush3.msra.mxu0 %v31_v5 }
0x2b00   :  { %2719 = vmatprep.subr.mxu0 %v2885_v0 }
0x2b01   :  { %2695 = vmatprep.mubr.msk.f32.mxu0 %vm207_vm3, %v1816_v45  ;;  %2720 = vmatpush3.msra.mxu0 %v30_v56 }
0x2b02   :  { %2696 = vmatmul.mubr.msk.f32.gmra.mxu0 %vm207_vm3, %v1817_v46  ;;  %2735 = vmatprep.subr.mxu0 %v2885_v0 }
0x2b03   :  { %2721 = vmatprep.mubr.msk.f32.mxu0 %vm2886_vm1, %v2885_v0 }
0x2b39   :  { %v2079_v12 = vpop.permute.xlu1 %2078 }
0x2bba   :  { %v2691_v6 = vpop.f32.mrf.mxu0 }
0x2bbc   :  { %v1902_v49 = vpop.f32.mrf.mxu0 }
0x2bbe   :  { %v2694_v50 = vpop.f32.mrf.mxu0 }
0x2bc0   :  { %v1912_v51 = vpop.f32.mrf.mxu0 }
0x2bc2   :  { %v2697_v15 = vpop.f32.mrf.mxu0 }
0x2bc3   :  { %2699 = vmatpush3.msra.mxu1 %v2697_v15 }
0x2bc4   :  { %v1922_v18 = vpop.f32.mrf.mxu0  ;;  %2700 = vmatprep.subr.mxu1 %v2885_v0 }
0x2bc5   :  { %2701 = vmatpush3.msra.mxu1 %v1922_v18 }
0x2bc6   :  { %2702 = vmatprep.subr.mxu1 %v2885_v0 }
0x2bc7   :  { %2703 = vmatpush3.msra.mxu1 %v2694_v50 }
0x2bc8   :  { %2704 = vmatprep.subr.mxu1 %v2885_v0 }
0x2bc9   :  { %2705 = vmatpush3.msra.mxu1 %v1912_v51 }
0x2bca   :  { %2706 = vmatprep.subr.mxu1 %v2885_v0 }
0x2bcb   :  { %2707 = vmatpush3.msra.mxu1 %v2691_v6 }
0x2bcc   :  { %2708 = vmatprep.subr.mxu1 %v2885_v0 }
0x2bcd   :  { %2709 = vmatpush3.msra.mxu1 %v1902_v49 }
0x2bce   :  { %2711 = vmatmul.mubr.msk.f32.vlgmr.msra.gmra.mxu1 %vm1480_vm5, %v44_v13  ;;  %2724 = vmatprep.subr.mxu1 %v2885_v0 }
0x2bcf   :  { %2725 = vmatpush3.msra.mxu1 %v29_v52  ;;  %2732 = vmatprep.mubr.msk.f32.mxu1 %vm2886_vm1, %v2885_v0 }
0x2bd0   :  { %2726 = vmatprep.subr.mxu1 %v2885_v0 }
0x2bd1   :  { %2727 = vmatpush3.msra.mxu1 %v28_v53 }
0x2bd2   :  { %2728 = vmatprep.subr.mxu1 %v2885_v0 }
0x2bd3   :  { %2729 = vmatpush3.msra.mxu1 %v27_v54 }
0x2bd4   :  { %2730 = vmatprep.subr.mxu1 %v2885_v0 }
0x2bd5   :  { %2731 = vmatpush3.msra.mxu1 %v26_v55 }
0x2bd6   :  { %2733 = vmatmul.mubr.msk.f32.vlgmr.msra.gmra.mxu1 %vm207_vm3, %v2079_v12 }
0x2c8e   :  { %v2000_v57 = vpop.f32.mrf.mxu1 }
0x2c8f   :  { %v2001_v58 = vadd.f32 %v3340_v31, %v2000_v57 }
0x2c90   :  { %v2712_v59 = vpop.f32.mrf.mxu1 }
0x2c91   :  { %2722 = vmatmul.mubr.msk.f32.vlgmr.msra.gmra.mxu0 %vm207_vm3, %v2001_v58 }
0x2c92   :  { %2743 = vmatprep.mubr.msk.f32.mxu0 %vm2886_vm1, %v2885_v0  ;;  %2736 = vmatpush3.msra.mxu0 %v37_v61 }
0x2c93   :  { %2737 = vmatprep.subr.mxu0 %v2885_v0 }
0x2c94   :  { %2738 = vmatpush3.msra.mxu0 %v36_v62 }
0x2c95   :  { %2739 = vmatprep.subr.mxu0 %v2885_v0 }
0x2c96   :  { %v2148_v60 = vpop.f32.mrf.mxu1  ;;  %2740 = vmatpush3.msra.mxu0 %v35_v63 }
0x2c97   :  { %2741 = vmatprep.subr.mxu0 %v2885_v0  ;;  %v2330_v0 = vld [vmem:[%s3432_s2 + $0xf4] ss:$0 sm:$0xff] }
0x2c98   :  { %v2734_v7 = vpop.f32.mrf.mxu1  ;;  %2742 = vmatpush3.msra.mxu0 %v34_v2 }
0x2d51   :  { %v2073_v14 = vpop.f32.mrf.mxu0 }
0x2d52   :  { %v2149_v16 = vadd.f32 %v2148_v60, %v2073_v14 }
0x2d53   :  { %v2723_v8 = vpop.f32.mrf.mxu0 }
0x2d54   :  { %v2156_v17 = vadd.f32 %v2329_v4, %v2149_v16 }
0x2d56   :  { %v2157_v19 = vmax.f32 %v2156_v17, 0.0 }
0x2d58   :  { %2744 = vmatmul.mubr.msk.f32.vlgmr.msra.gmra.mxu0 %vm207_vm3, %v2157_v19 }
0x2e18   :  { %v2231_v10 = vpop.f32.mrf.mxu0 }
0x2e19   :  { %v2232_v20 = vadd.f32 %v2330_v0, %v2231_v10 }
0x2e1a   :  { %v2745_v1 = vpop.f32.mrf.mxu0 }
0x2e1b   :  { %v2236_v21 = vsel %vm2235_vm6, %v2232_v20, -inf }
0x2e1c   :  { %2237 = vmax.xlane.f32.xlu0 %v2236_v21 }
0x2ea5   :  { %v2238_v22 = vpop.xlane.xlu0 %2237 }
0x2ea6   :  { %v2239_v23 = vsub.f32 %v2232_v20, %v2238_v22 }
0x2ea8   :  { %v2240_v24 = vmul.f32 1.442695, %v2239_v23 }
0x2eaa   :  { %2880 = vpow2.f32 %v2240_v24 }
0x2eb7   :  { %v2881_v25 = vpop.eup %2880 }
0x2eb8   :  { %v2242_v26 = vsel %vm2235_vm6, %v2881_v25, 0.0 }
0x2eb9   :  { %2243 = vadd.xlane.f32.xlu1 %v2242_v26 }
0x2f42   :  { %v2244_v27 = vpop.xlane.xlu1 %2243 }
0x2f43   :  { %2882 = vlog2.f32 %v2244_v27 }
0x2f50   :  { %v2883_v29 = vpop.eup %2882 }
0x2f51   :  { %v2246_v9 = vmul.f32 0.6931472, %v2883_v29 }
0x2f53   :  { %v2247_v30 = vadd.f32 %v2246_v9, %v2238_v22 }
0x2f55   :  { %v2248_v31 = vsub.f32 %v2232_v20, %v2247_v30 }
0x2f57   :  { %2249 = vst.msk [vmem:[%s3435_s3] sm:$0xff] %vm2235_vm6, %v2248_v31 }

</bundles_post_ra>
